<compile_context>
chip_gen: v7x
topology: tpu7x:2x2x1
jax: 0.10.0
libtpu: 0.0.40
codegen_flags: <defaults>
</compile_context>

<pallas_src>
import jax
import jax.numpy as jnp
import numpy as np
from jax.experimental import pallas as pl
from jax.experimental.pallas import tpu as pltpu

_LANE = 128     # last dim padded to a multiple of this (lane-dense)
_SUBLANE = 8    # second-to-last dim multiple


def _round_up(x, m):
    return (x + m - 1) // m * m


def _default_row_tile():
    """512 on dual-TC v7x (>=2 parallel grid steps); 1024 on single-TC v5e/v6e."""
    try:
        kind = jax.devices()[0].device_kind.lower()
    except Exception:
        return 512
    return 512 if "v7" in kind else 1024


def _vmem_limit_bytes(row_tile, vp, vo_p):
    """Right-sized VMEM budget derived from the actual (padded) block sizes."""
    def blk_bytes(rows, cols, itemsize):
        return _round_up(rows, _SUBLANE) * _round_up(cols, _LANE) * itemsize

    ids_b   = blk_bytes(row_tile, 1, 4)        # int32 token-id tile
    table_b = blk_bytes(vp, vo_p, 2)           # bf16 fused table
    bias_b  = blk_bytes(1, vo_p, 4)            # f32 fused bias
    out_b   = blk_bytes(row_tile, vo_p, 4)     # f32 logits tile
    double_buffered = 2 * (ids_b + table_b + bias_b + out_b)
    # in-kernel temporaries: one-hot (TM, Vp) bf16 + f32 logits before store
    temporaries = blk_bytes(row_tile, vp, 2) + blk_bytes(row_tile, vo_p, 4)
    # 2x headroom + 4 MiB for compiler internal scratch / spills.
    return 2 * (double_buffered + temporaries) + (4 << 20)


def _tagger_kernel(idx_ref, table_ref, bias_ref, o_ref):
    # idx_ref  : (TM, 1)      int32  token ids for this row tile
    # table_ref: (Vp, Vo_p)   bf16   fused table  = emb @ W1 @ W2  (zero-padded)
    # bias_ref : (1, Vo_p)    f32    fused bias   = b1 @ W2 + b2
    # o_ref    : (TM, Vo_p)   f32    lane-dense logits tile
    tm = idx_ref.shape[0]
    vocab_p = table_ref.shape[0]

    ids = idx_ref[...]                                            # (TM, 1)
    iota = jax.lax.broadcasted_iota(jnp.int32, (tm, vocab_p), 1)  # (TM, Vp)
    onehot = (ids == iota).astype(jnp.bfloat16)                   # no f32 temp

    # Single MXU matmul: exact row pick of the fused table, f32 accumulation,
    # f32 bias add.  (padding_idx row of emb is zero -> fused row is zero ->
    # logits = bias for pad tokens, matching the PyTorch module.)
    logits = jnp.dot(onehot, table_ref[...],
                     preferred_element_type=jnp.float32) + bias_ref[...]
    o_ref[...] = logits.astype(o_ref.dtype)


def prepare_ner_params(emb_table, w1, b1, w2, b2):
    """One-time prep (run once, outside the per-call path).

    Folds the activation-free chain into a single fused table/bias:
      logits = onehot(X) @ (emb @ W1 @ W2) + (b1 @ W2 + b2)
    Weights stored as (in, out) layout.
    """
    VOCAB, E = emb_table.shape
    E2, H = w1.shape
    H2, V_out = w2.shape
    assert E == E2 and H == H2

    emb_f = emb_table.astype(jnp.float32)
    w1_f = w1.astype(jnp.float32)
    w2_f = w2.astype(jnp.float32)
    fused = (emb_f @ w1_f) @ w2_f                                   # (V, V_out)
    fused_bias = b1.astype(jnp.float32) @ w2_f + b2.astype(jnp.float32)

    Vp = _round_up(VOCAB, _LANE)
    Vo_p = _round_up(V_out, _LANE)
    table_p = jnp.zeros((Vp, Vo_p), jnp.bfloat16).at[:VOCAB, :V_out].set(
        fused.astype(jnp.bfloat16))
    bias_p = jnp.zeros((1, Vo_p), jnp.float32).at[:, :V_out].set(
        fused_bias[None, :])
    return {"table": table_p, "bias": bias_p, "vocab": VOCAB, "v_out": V_out}


def ner_tagger_forward(x_idx, params, *, row_tile=None):
    """x_idx: (B, S) int32 token ids; params from prepare_ner_params().

    Returns f32 logits of shape (B, S, V_out).
    """
    if row_tile is None:
        row_tile = _default_row_tile()
    assert row_tile % _SUBLANE == 0

    B, S = x_idx.shape
    table_p = params["table"]          # (Vp, Vo_p) bf16
    bias_p = params["bias"]            # (1, Vo_p)  f32
    v_out = params["v_out"]
    Vp, Vo_p = table_p.shape

    N = B * S
    N_pad = _round_up(max(N, row_tile), row_tile)
    ids2d = jnp.zeros((N_pad, 1), jnp.int32).at[:N, 0].set(
        x_idx.reshape(-1).astype(jnp.int32))

    out = pl.pallas_call(
        _tagger_kernel,
        out_shape=jax.ShapeDtypeStruct((N_pad, Vo_p), jnp.float32),
        grid_spec=pltpu.PrefetchScalarGridSpec(
            num_scalar_prefetch=0,
            grid=(N_pad // row_tile,),
            in_specs=[
                pl.BlockSpec((row_tile, 1), lambda i: (i, 0)),   # token ids
                pl.BlockSpec((Vp, Vo_p),    lambda i: (0, 0)),   # fused table
                pl.BlockSpec((1, Vo_p),     lambda i: (0, 0)),   # fused bias
            ],
            out_specs=pl.BlockSpec((row_tile, Vo_p), lambda i: (i, 0)),
        ),
        compiler_params=pltpu.CompilerParams(
            dimension_semantics=("parallel",),
            vmem_limit_bytes=_vmem_limit_bytes(row_tile, Vp, Vo_p),
        ),
    )(ids2d, table_p, bias_p)

    return out[:N, :v_out].reshape(B, S, v_out)


def _init_params(key, vocab_size, embedding_size, hidden_size, pad_index):
    k_emb, k_w1, k_b1, k_w2, k_b2 = jax.random.split(key, 5)
    # nn.Embedding: N(0, 1), padding row zeroed.
    emb = jax.random.normal(k_emb, (vocab_size, embedding_size), jnp.float32)
    emb = emb.at[pad_index].set(0.0)
    # nn.Linear: U(-1/sqrt(fan_in), 1/sqrt(fan_in)); stored as (in, out).
    lim1 = 1.0 / np.sqrt(embedding_size)
    w1 = jax.random.uniform(k_w1, (embedding_size, hidden_size), jnp.float32,
                            -lim1, lim1)
    b1 = jax.random.uniform(k_b1, (hidden_size,), jnp.float32, -lim1, lim1)
    lim2 = 1.0 / np.sqrt(hidden_size)
    w2 = jax.random.uniform(k_w2, (hidden_size, vocab_size), jnp.float32,
                            -lim2, lim2)
    b2 = jax.random.uniform(k_b2, (vocab_size,), jnp.float32, -lim2, lim2)
    return emb, w1, b1, w2, b2


if __name__ == "__main__":
    # Module-consistent small shapes: B*S = 1024 tokens -> 1 grid step at
    # row_tile=1024 (v5e/v6e) or 2 parallel steps at row_tile=512 (v7x).
    B, S = 8, 128
    VOCAB = 16          # in-vocab == out-vocab in the reference module
    EMB, HID = 32, 32
    PAD = 0

    key = jax.random.PRNGKey(0)
    k_params, k_x = jax.random.split(key)
    emb, w1, b1, w2, b2 = _init_params(k_params, VOCAB, EMB, HID, PAD)
    x = jax.random.randint(k_x, (B, S), 0, VOCAB, dtype=jnp.int32)

    # One-time fused/padded parameter prep (hoisted out of the forward call).
    params = prepare_ner_params(emb, w1, b1, w2, b2)

    logits = ner_tagger_forward(x, params)
    logits = jax.block_until_ready(logits)
    assert logits.shape == (B, S, VOCAB)

    # --- reference checks -------------------------------------------------
    # (a) apples-to-apples: same bf16-rounded fused table, f32 bias add.
    #     The in-kernel one-hot matmul is an exact row pick, so this should
    #     match to float round-off.
    fused32 = (emb @ w1) @ w2                                   # (V, V_out)
    fused_bias = b1 @ w2 + b2                                   # (V_out,)
    fused_bf = fused32.astype(jnp.bfloat16).astype(jnp.float32)
    ref_a = (jnp.take(fused_bf, x.reshape(-1), axis=0)
             + fused_bias).reshape(B, S, VOCAB)
    assert np.allclose(np.asarray(logits), np.asarray(ref_a),
                       atol=1e-5, rtol=1e-5)

    # (b) module semantics: full-f32 PyTorch-equivalent two-Linear math
    #     (bf16-rounding of the fused table is the only approximation).
    e32 = jnp.take(emb, x.reshape(-1), axis=0)
    ref32 = ((e32 @ w1 + b1) @ w2 + b2).reshape(B, S, VOCAB)
    assert np.allclose(np.asarray(logits), np.asarray(ref32),
                       atol=3e-2, rtol=3e-2)

    print("KERNEL_OK")
</pallas_src>

<mosaic_0001>
module attributes {stable_mosaic.version = 11 : i64} {
  func.func @_tagger_kernel(%arg0: i32, %arg1: memref<1024x1xi32, #tpu.memory_space<vmem>>, %arg2: memref<128x128xbf16, #tpu.memory_space<vmem>>, %arg3: memref<1x128xf32, #tpu.memory_space<vmem>>, %arg4: memref<1024x128xf32, #tpu.memory_space<vmem>>) attributes {dimension_semantics = [#tpu.dimension_semantics<parallel>], iteration_bounds = array<i64: 1>, scalar_prefetch = 0 : i64, scratch_operands = 0 : i64, tpu.core_type = #tpu.core_type<tc>, window_params = [{transform_indices = @transform_0, window_bounds = array<i64: 1024, 1>}, {pipeline_mode = #tpu.pipeline_mode<synchronous>, transform_indices = @transform_1, window_bounds = array<i64: 128, 128>}, {pipeline_mode = #tpu.pipeline_mode<synchronous>, transform_indices = @transform_2, window_bounds = array<i64: 1, 128>}, {transform_indices = @transform_3, window_bounds = array<i64: 1024, 128>}]} {
    %c0 = arith.constant 0 : index
    %c0_0 = arith.constant 0 : index
    %0 = vector.load %arg1[%c0, %c0_0] : memref<1024x1xi32, #tpu.memory_space<vmem>>, vector<1024x1xi32>
    %1 = tpu.iota {dimensions = array<i32: 1>} : vector<1024x128xi32>
    %2 = vector.broadcast %0 : vector<1024x1xi32> to vector<1024x128xi32>
    %3 = arith.cmpi eq, %2, %1 : vector<1024x128xi32>
    %4 = arith.extui %3 : vector<1024x128xi1> to vector<1024x128xi32>
    %5 = arith.sitofp %4 : vector<1024x128xi32> to vector<1024x128xf32>
    %6 = arith.truncf %5 : vector<1024x128xf32> to vector<1024x128xbf16>
    %c0_1 = arith.constant 0 : index
    %c0_2 = arith.constant 0 : index
    %7 = vector.load %arg2[%c0_1, %c0_2] : memref<128x128xbf16, #tpu.memory_space<vmem>>, vector<128x128xbf16>
    %cst = arith.constant dense<0.000000e+00> : vector<1024x128xf32>
    %8 = tpu.matmul %6, %7, %cst {dimension_numbers = #tpu.dot_dimension_numbers<[1], [0], [0], [1], [0, 0, 1, 1], [], []>} : vector<1024x128xbf16>, vector<128x128xbf16>, vector<1024x128xf32> -> vector<1024x128xf32>
    %c0_3 = arith.constant 0 : index
    %c0_4 = arith.constant 0 : index
    %9 = vector.load %arg3[%c0_3, %c0_4] : memref<1x128xf32, #tpu.memory_space<vmem>>, vector<1x128xf32>
    %10 = vector.broadcast %9 : vector<1x128xf32> to vector<1024x128xf32>
    %11 = arith.addf %8, %10 : vector<1024x128xf32>
    %c0_5 = arith.constant 0 : index
    %c0_6 = arith.constant 0 : index
    %12 = vector.load %arg4[%c0_5, %c0_6] : memref<1024x128xf32, #tpu.memory_space<vmem>>, vector<1024x128xf32>
    tpu.vector_store %arg4[%c0_5, %c0_6], %11 {strides = array<i32>} : memref<1024x128xf32, #tpu.memory_space<vmem>>, vector<1024x128xf32>,
    return
  }
  func.func @transform_0(%arg0: i32) -> (i32, i32) {
    %c0_i32 = arith.constant 0 : i32
    %c0_i32_0 = arith.constant 0 : i32
    return %arg0, %c0_i32 : i32, i32
  }
  func.func @transform_1(%arg0: i32) -> (i32, i32) {
    %c0_i32 = arith.constant 0 : i32
    %c0_i32_0 = arith.constant 0 : i32
    %c0_i32_1 = arith.constant 0 : i32
    return %c0_i32, %c0_i32_0 : i32, i32
  }
  func.func @transform_2(%arg0: i32) -> (i32, i32) {
    %c0_i32 = arith.constant 0 : i32
    %c0_i32_0 = arith.constant 0 : i32
    %c0_i32_1 = arith.constant 0 : i32
    return %c0_i32, %c0_i32_0 : i32, i32
  }
  func.func @transform_3(%arg0: i32) -> (i32, i32) {
    %c0_i32 = arith.constant 0 : i32
    %c0_i32_0 = arith.constant 0 : i32
    return %arg0, %c0_i32 : i32, i32
  }
}

</mosaic_0001>

<bundles_post_ra>
// kernel: tpu_custom_call.1
= control target key start
LH: loop header
LB: loop body
LE: loop exit
PB: predicated region body
PF: predicated region fallthrough
CT: control target
= control target key end

     0   :  { %v2274_v2 = vmov 0   ;;  %s3049_s0 = inlined_call_operand.vmem [shape: s32[1024,1], index: 0, kind: input, shape index: {}]   ;;  %s3050_s1 = inlined_call_operand.vmem [shape: bf16[128,128], index: 1, kind: input, shape index: {}]   ;;  %s3051_s2 = inlined_call_operand.vmem [shape: f32[1,128], index: 2, kind: input, shape index: {}]   ;;  %s3052_s3 = inlined_call_operand.hbm [shape: f32[1024,128], index: 3, kind: output, shape index: {}]  }
   0x1   :  { %v18_v0 = vld [vmem:[%s3049_s0 + $0x10] sm:$0xff]  ;;  %v16_v1 = vld [vmem:[%s3049_s0] sm:$0xff]  ;;  %2241 = vset.pattern.permute.xlu1 %v2274_v2  ;;  %2240 = vset.pattern.permute.xlu0 %v2274_v2  ;;  %v19_v3 = vld [vmem:[%s3049_s0 + $0x18] sm:$0xff] }
   0x2   :  { %153 = vperm.xlu1 %2241, %v18_v0   ;;  %147 = vperm.xlu0 %2240, %v16_v1   ;;  %v17_v4 = vld [vmem:[%s3049_s0 + $0x8] sm:$0xff]  ;;  %v20_v6 = vld [vmem:[%s3049_s0 + $0x20] sm:$0xff]  ;;  %v23_v7 = vld [vmem:[%s3049_s0 + $0x38] sm:$0xff] }
   0x3   :  { %v21_v5 = vld [vmem:[%s3049_s0 + $0x28] sm:$0xff]  ;;  %v22_v8 = vld [vmem:[%s3049_s0 + $0x30] sm:$0xff]  ;;  %v24_v10 = vld [vmem:[%s3049_s0 + $0x40] sm:$0xff] }
   0x4   :  { %v25_v9 = vld [vmem:[%s3049_s0 + $0x48] sm:$0xff]  ;;  %v27_v11 = vld [vmem:[%s3049_s0 + $0x58] sm:$0xff]  ;;  %v26_v12 = vld [vmem:[%s3049_s0 + $0x50] sm:$0xff] }
   0x5   :  { %v2242_v13 = vld [vmem:[%s3050_s1] sm:$0xff]   ;;  %v2243_v14 = vld [vmem:[%s3050_s1 + $0x8] sm:$0xff]   ;;  %v2244_v17 = vld [vmem:[%s3050_s1 + $0x10] sm:$0xff]  }
   0x6   :  { %156 = vperm.xlu1 %2241, %v19_v3   ;;  %150 = vperm.xlu0 %2240, %v17_v4   ;;  %v29_v15 = vld [vmem:[%s3049_s0 + $0x68] sm:$0xff]  ;;  %v28_v16 = vld [vmem:[%s3049_s0 + $0x60] sm:$0xff]  ;;  %v31_v18 = vld [vmem:[%s3049_s0 + $0x78] sm:$0xff] }
   0x7   :  { %2075 = vmatprep.subr.bf16.mxu0 %v2242_v13  ;;  %2219 = vmatprep.subr.bf16.mxu1 %v2242_v13  ;;  %v30_v19 = vld [vmem:[%s3049_s0 + $0x70] sm:$0xff]  ;;  %v2245_v20 = vld [vmem:[%s3050_s1 + $0x18] sm:$0xff]   ;;  %v33_v21 = vld [vmem:[%s3049_s0 + $0x88] sm:$0xff] }
   0x8   :  { %2076 = vmatpush3.bf16.msra.mxu0 %v2242_v13  ;;  %2227 = vmatpush3.bf16.msra.mxu1 %v2242_v13  ;;  %v32_v22 = vld [vmem:[%s3049_s0 + $0x80] sm:$0xff]  ;;  %v35_v24 = vld [vmem:[%s3049_s0 + $0x98] sm:$0xff]  ;;  %v34_v25 = vld [vmem:[%s3049_s0 + $0x90] sm:$0xff] }
   0x9   :  { %2077 = vmatprep.subr.bf16.mxu0 %v2243_v14  ;;  %2220 = vmatprep.subr.bf16.mxu1 %v2243_v14  ;;  %v2246_v23 = vld [vmem:[%s3050_s1 + $0x20] sm:$0xff]   ;;  %v2247_v26 = vld [vmem:[%s3050_s1 + $0x28] sm:$0xff]  }
   0xa   :  { %162 = vperm.xlu1 %2241, %v21_v5   ;;  %159 = vperm.xlu0 %2240, %v20_v6  }
   0xc   :  { %2078 = vmatpush3.bf16.msra.mxu0 %v2243_v14  ;;  %2228 = vmatpush3.bf16.msra.mxu1 %v2243_v14 }
   0xd   :  { %2079 = vmatprep.subr.bf16.mxu0 %v2244_v17  ;;  %2221 = vmatprep.subr.bf16.mxu1 %v2244_v17 }
   0xe   :  { %168 = vperm.xlu1 %2241, %v23_v7   ;;  %165 = vperm.xlu0 %2240, %v22_v8  }
  0x10   :  { %2080 = vmatpush3.bf16.msra.mxu0 %v2244_v17  ;;  %2229 = vmatpush3.bf16.msra.mxu1 %v2244_v17 }
  0x11   :  { %2081 = vmatprep.subr.bf16.mxu0 %v2245_v20  ;;  %2222 = vmatprep.subr.bf16.mxu1 %v2245_v20 }
  0x12   :  { %174 = vperm.xlu1 %2241, %v25_v9   ;;  %171 = vperm.xlu0 %2240, %v24_v10  }
  0x14   :  { %2082 = vmatpush3.bf16.msra.mxu0 %v2245_v20  ;;  %2230 = vmatpush3.bf16.msra.mxu1 %v2245_v20 }
  0x15   :  { %2083 = vmatprep.subr.bf16.mxu0 %v2246_v23  ;;  %2223 = vmatprep.subr.bf16.mxu1 %v2246_v23 }
  0x16   :  { %180 = vperm.xlu1 %2241, %v27_v11   ;;  %177 = vperm.xlu0 %2240, %v26_v12  }
  0x1a   :  { %186 = vperm.xlu1 %2241, %v29_v15   ;;  %183 = vperm.xlu0 %2240, %v28_v16  }
  0x1e   :  { %192 = vperm.xlu1 %2241, %v31_v18   ;;  %189 = vperm.xlu0 %2240, %v30_v19  }
  0x22   :  { %198 = vperm.xlu1 %2241, %v33_v21   ;;  %195 = vperm.xlu0 %2240, %v32_v22  }
  0x23   :  { %8 = vsyncpa [#allocation3], 0  ;;  %2084 = vmatpush3.bf16.msra.mxu0 %v2246_v23  ;;  %2231 = vmatpush3.bf16.msra.mxu1 %v2246_v23  ;;  %v37_v27 = vld [vmem:[%s3049_s0 + $0xa8] sm:$0xff]  ;;  %v36_v28 = vld [vmem:[%s3049_s0 + $0xa0] sm:$0xff]  ;;  %v144_v9 = vlaneseq  ;;  %v2275_v21 = vmov 1.0|1.0  }
  0x24   :  { %2085 = vmatprep.subr.bf16.mxu0 %v2247_v26  ;;  %v2248_v29 = vld [vmem:[%s3050_s1 + $0x30] sm:$0xff]   ;;  %2224 = vmatprep.subr.bf16.mxu1 %v2247_v26  ;;  %v39_v30 = vld [vmem:[%s3049_s0 + $0xb8] sm:$0xff]  ;;  %v41_v33 = vld [vmem:[%s3049_s0 + $0xc8] sm:$0xff] }
  0x25   :  { %v38_v31 = vld [vmem:[%s3049_s0 + $0xb0] sm:$0xff]  ;;  %v2249_v32 = vld [vmem:[%s3050_s1 + $0x38] sm:$0xff]   ;;  %v40_v34 = vld [vmem:[%s3049_s0 + $0xc0] sm:$0xff]  ;;  %v2521_v14 = vand.u32 127, %v144_v9 }
  0x26   :  { %204 = vperm.xlu1 %2241, %v35_v24   ;;  %201 = vperm.xlu0 %2240, %v34_v25   ;;  %v80_v35 = vld [vmem:[%s3049_s0 + $0x200] sm:$0xff]  ;;  %v42_v36 = vld [vmem:[%s3049_s0 + $0xd0] sm:$0xff]  ;;  %v81_v38 = vld [vmem:[%s3049_s0 + $0x208] sm:$0xff] }
  0x27   :  { %2086 = vmatpush3.bf16.msra.mxu0 %v2247_v26  ;;  %2232 = vmatpush3.bf16.msra.mxu1 %v2247_v26  ;;  %v82_v37 = vld [vmem:[%s3049_s0 + $0x210] sm:$0xff]  ;;  %v84_v39 = vld [vmem:[%s3049_s0 + $0x220] sm:$0xff]  ;;  %v83_v40 = vld [vmem:[%s3049_s0 + $0x218] sm:$0xff] }
  0x28   :  { %2087 = vmatprep.subr.bf16.mxu0 %v2248_v29  ;;  %2225 = vmatprep.subr.bf16.mxu1 %v2248_v29  ;;  %v86_v41 = vld [vmem:[%s3049_s0 + $0x230] sm:$0xff]  ;;  %v85_v42 = vld [vmem:[%s3049_s0 + $0x228] sm:$0xff]  ;;  %v88_v43 = vld [vmem:[%s3049_s0 + $0x240] sm:$0xff] }
  0x29   :  { %v87_v44 = vld [vmem:[%s3049_s0 + $0x238] sm:$0xff]  ;;  %v90_v45 = vld [vmem:[%s3049_s0 + $0x250] sm:$0xff]  ;;  %v89_v46 = vld [vmem:[%s3049_s0 + $0x248] sm:$0xff] }
  0x2a   :  { %210 = vperm.xlu1 %2241, %v37_v27   ;;  %207 = vperm.xlu0 %2240, %v36_v28   ;;  %v92_v47 = vld [vmem:[%s3049_s0 + $0x260] sm:$0xff]  ;;  %v91_v48 = vld [vmem:[%s3049_s0 + $0x258] sm:$0xff]  ;;  %v94_v49 = vld [vmem:[%s3049_s0 + $0x270] sm:$0xff] }
  0x2b   :  { %2088 = vmatpush3.bf16.msra.mxu0 %v2248_v29  ;;  %2233 = vmatpush3.bf16.msra.mxu1 %v2248_v29  ;;  %v93_v50 = vld [vmem:[%s3049_s0 + $0x268] sm:$0xff]  ;;  %v96_v51 = vld [vmem:[%s3049_s0 + $0x280] sm:$0xff]  ;;  %v95_v52 = vld [vmem:[%s3049_s0 + $0x278] sm:$0xff] }
  0x2c   :  { %2089 = vmatprep.subr.bf16.mxu0 %v2249_v32  ;;  %2226 = vmatprep.subr.bf16.mxu1 %v2249_v32  ;;  %v98_v53 = vld [vmem:[%s3049_s0 + $0x290] sm:$0xff]  ;;  %v97_v54 = vld [vmem:[%s3049_s0 + $0x288] sm:$0xff]  ;;  %v100_v55 = vld [vmem:[%s3049_s0 + $0x2a0] sm:$0xff] }
  0x2d   :  { %v99_v56 = vld [vmem:[%s3049_s0 + $0x298] sm:$0xff]  ;;  %v102_v57 = vld [vmem:[%s3049_s0 + $0x2b0] sm:$0xff]  ;;  %v101_v58 = vld [vmem:[%s3049_s0 + $0x2a8] sm:$0xff] }
  0x2e   :  { %216 = vperm.xlu1 %2241, %v39_v30   ;;  %213 = vperm.xlu0 %2240, %v38_v31   ;;  %v104_v59 = vld [vmem:[%s3049_s0 + $0x2c0] sm:$0xff]  ;;  %v103_v60 = vld [vmem:[%s3049_s0 + $0x2b8] sm:$0xff]  ;;  %v105_v62 = vld [vmem:[%s3049_s0 + $0x2c8] sm:$0xff] }
  0x2f   :  { %2090 = vmatpush3.bf16.msra.mxu0 %v2249_v32  ;;  %2234 = vmatpush3.bf16.msra.mxu1 %v2249_v32  ;;  %v43_v61 = vld [vmem:[%s3049_s0 + $0xd8] sm:$0xff]  ;;  %v106_v0 = vld [vmem:[%s3049_s0 + $0x2d0] sm:$0xff]  ;;  %v45_v1 = vld [vmem:[%s3049_s0 + $0xe8] sm:$0xff] }
  0x30   :  { %v107_v63 = vld [vmem:[%s3049_s0 + $0x2d8] sm:$0xff]  ;;  %v44_v2 = vld [vmem:[%s3049_s0 + $0xe0] sm:$0xff]  ;;  %v109_v3 = vld [vmem:[%s3049_s0 + $0x2e8] sm:$0xff] }
  0x31   :  { %v108_v4 = vld [vmem:[%s3049_s0 + $0x2e0] sm:$0xff]  ;;  %v47_v5 = vld [vmem:[%s3049_s0 + $0xf8] sm:$0xff]  ;;  %v46_v6 = vld [vmem:[%s3049_s0 + $0xf0] sm:$0xff] }
  0x32   :  { %222 = vperm.xlu1 %2241, %v41_v33   ;;  %219 = vperm.xlu0 %2240, %v40_v34   ;;  %v111_v7 = vld [vmem:[%s3049_s0 + $0x2f8] sm:$0xff]  ;;  %v110_v8 = vld [vmem:[%s3049_s0 + $0x2f0] sm:$0xff]  ;;  %v49_v10 = vld [vmem:[%s3049_s0 + $0x108] sm:$0xff] }
  0x33   :  { %v48_v11 = vld [vmem:[%s3049_s0 + $0x100] sm:$0xff]  ;;  %v113_v15 = vld [vmem:[%s3049_s0 + $0x308] sm:$0xff]  ;;  %v51_v19 = vld [vmem:[%s3049_s0 + $0x118] sm:$0xff] }
  0x34   :  { %v112_v16 = vld [vmem:[%s3049_s0 + $0x300] sm:$0xff]  ;;  %v50_v20 = vld [vmem:[%s3049_s0 + $0x110] sm:$0xff]  ;;  %v115_v24 = vld [vmem:[%s3049_s0 + $0x318] sm:$0xff] }
  0x35   :  { %v114_v25 = vld [vmem:[%s3049_s0 + $0x310] sm:$0xff]  ;;  %v53_v28 = vld [vmem:[%s3049_s0 + $0x128] sm:$0xff]  ;;  %v52_v29 = vld [vmem:[%s3049_s0 + $0x120] sm:$0xff] }
  0x36   :  { %339 = vperm.xlu1 %2241, %v80_v35   ;;  %225 = vperm.xlu0 %2240, %v42_v36   ;;  %v117_v32 = vld [vmem:[%s3049_s0 + $0x328] sm:$0xff]  ;;  %v116_v33 = vld [vmem:[%s3049_s0 + $0x320] sm:$0xff]  ;;  %v55_v36 = vld [vmem:[%s3049_s0 + $0x138] sm:$0xff] }
  0x37   :  { %v126_v9 = vld [vmem:[%s3049_s0 + $0x370] sm:$0xff] }
  0x3a   :  { %345 = vperm.xlu1 %2241, %v82_v37   ;;  %342 = vperm.xlu0 %2240, %v81_v38   ;;  %v54_v37 = vld [vmem:[%s3049_s0 + $0x130] sm:$0xff] }
  0x3e   :  { %351 = vperm.xlu1 %2241, %v84_v39   ;;  %348 = vperm.xlu0 %2240, %v83_v40   ;;  %v119_v40 = vld [vmem:[%s3049_s0 + $0x338] sm:$0xff] }
  0x42   :  { %357 = vperm.xlu1 %2241, %v86_v41   ;;  %354 = vperm.xlu0 %2240, %v85_v42   ;;  %v118_v41 = vld [vmem:[%s3049_s0 + $0x330] sm:$0xff] }
  0x46   :  { %363 = vperm.xlu1 %2241, %v88_v43   ;;  %360 = vperm.xlu0 %2240, %v87_v44   ;;  %v57_v44 = vld [vmem:[%s3049_s0 + $0x148] sm:$0xff] }
  0x4a   :  { %369 = vperm.xlu1 %2241, %v90_v45   ;;  %366 = vperm.xlu0 %2240, %v89_v46   ;;  %v56_v45 = vld [vmem:[%s3049_s0 + $0x140] sm:$0xff] }
  0x4e   :  { %375 = vperm.xlu1 %2241, %v92_v47   ;;  %372 = vperm.xlu0 %2240, %v91_v48   ;;  %v121_v48 = vld [vmem:[%s3049_s0 + $0x348] sm:$0xff] }
  0x52   :  { %381 = vperm.xlu1 %2241, %v94_v49   ;;  %378 = vperm.xlu0 %2240, %v93_v50   ;;  %v120_v49 = vld [vmem:[%s3049_s0 + $0x340] sm:$0xff] }
  0x56   :  { %387 = vperm.xlu1 %2241, %v96_v51   ;;  %384 = vperm.xlu0 %2240, %v95_v52   ;;  %v59_v52 = vld [vmem:[%s3049_s0 + $0x158] sm:$0xff] }
  0x5a   :  { %393 = vperm.xlu1 %2241, %v98_v53   ;;  %390 = vperm.xlu0 %2240, %v97_v54   ;;  %v58_v53 = vld [vmem:[%s3049_s0 + $0x150] sm:$0xff] }
  0x5e   :  { %399 = vperm.xlu1 %2241, %v100_v55   ;;  %396 = vperm.xlu0 %2240, %v99_v56   ;;  %v123_v56 = vld [vmem:[%s3049_s0 + $0x358] sm:$0xff] }
  0x62   :  { %405 = vperm.xlu1 %2241, %v102_v57   ;;  %402 = vperm.xlu0 %2240, %v101_v58   ;;  %v122_v57 = vld [vmem:[%s3049_s0 + $0x350] sm:$0xff] }
  0x66   :  { %411 = vperm.xlu1 %2241, %v104_v59   ;;  %408 = vperm.xlu0 %2240, %v103_v60   ;;  %v61_v60 = vld [vmem:[%s3049_s0 + $0x168] sm:$0xff] }
  0x6a   :  { %228 = vperm.xlu1 %2241, %v43_v61   ;;  %414 = vperm.xlu0 %2240, %v105_v62   ;;  %v60_v61 = vld [vmem:[%s3049_s0 + $0x160] sm:$0xff] }
  0x6e   :  { %420 = vperm.xlu1 %2241, %v107_v63   ;;  %417 = vperm.xlu0 %2240, %v106_v0   ;;  %v125_v0 = vld [vmem:[%s3049_s0 + $0x368] sm:$0xff] }
  0x72   :  { %234 = vperm.xlu1 %2241, %v45_v1   ;;  %231 = vperm.xlu0 %2240, %v44_v2   ;;  %v124_v1 = vld [vmem:[%s3049_s0 + $0x360] sm:$0xff] }
  0x76   :  { %426 = vperm.xlu1 %2241, %v109_v3   ;;  %423 = vperm.xlu0 %2240, %v108_v4   ;;  %v63_v4 = vld [vmem:[%s3049_s0 + $0x178] sm:$0xff] }
  0x7a   :  { %240 = vperm.xlu1 %2241, %v47_v5   ;;  %237 = vperm.xlu0 %2240, %v46_v6   ;;  %v62_v5 = vld [vmem:[%s3049_s0 + $0x170] sm:$0xff] }
  0x7e   :  { %432 = vperm.xlu1 %2241, %v111_v7   ;;  %429 = vperm.xlu0 %2240, %v110_v8   ;;  %v127_v8 = vld [vmem:[%s3049_s0 + $0x378] sm:$0xff] }
  0x81   :  { %v154_v12 = vpop.permute.xlu1 %153  ;;  %v148_v13 = vpop.permute.xlu0 %147 }
  0x82   :  { %246 = vperm.xlu1 %2241, %v49_v10   ;;  %243 = vperm.xlu0 %2240, %v48_v11   ;;  %vm532_vm0 = vcmp.eq.s32.totalorder %v154_v12, %v2521_v14  ;;  %vm530_vm4 = vcmp.eq.s32.totalorder %v148_v13, %v2521_v14  ;;  %v65_v12 = vld [vmem:[%s3049_s0 + $0x188] sm:$0xff]  ;;  %v64_v13 = vld [vmem:[%s3049_s0 + $0x180] sm:$0xff] }
  0x85   :  { %v157_v17 = vpop.permute.xlu1 %156  ;;  %v151_v18 = vpop.permute.xlu0 %150 }
  0x86   :  { %vm533_vm1 = vcmp.eq.s32.totalorder %v157_v17, %v2521_v14  ;;  %438 = vperm.xlu1 %2241, %v113_v15   ;;  %435 = vperm.xlu0 %2240, %v112_v16   ;;  %vm531_vm2 = vcmp.eq.s32.totalorder %v151_v18, %v2521_v14  ;;  %v129_v17 = vld [vmem:[%s3049_s0 + $0x388] sm:$0xff]  ;;  %v128_v18 = vld [vmem:[%s3049_s0 + $0x380] sm:$0xff] }
  0x87   :  { %vm1877_vm3 = vmpackc.low %vm533_vm1, %vm532_vm0 }
  0x88   :  { %vm1875_vm5 = vmpackc.low %vm531_vm2, %vm530_vm4 }
  0x89   :  { %2091 = vmatprep.mubr.msk.bf16.mxu0 %vm1875_vm5, %v2275_v21  ;;  %v163_v22 = vpop.permute.xlu1 %162  ;;  %v160_v23 = vpop.permute.xlu0 %159 }
  0x8a   :  { %vm535_vm6 = vcmp.eq.s32.totalorder %v163_v22, %v2521_v14  ;;  %2092 = vmatmul.mubr.msk.bf16.vlgmr.msra.gmra.mrb[0].mxu0 %vm1877_vm3, %v2275_v21  ;;  %vm534_vm7 = vcmp.eq.s32.totalorder %v160_v23, %v2521_v14  ;;  %252 = vperm.xlu1 %2241, %v51_v19   ;;  %v67_v22 = vld [vmem:[%s3049_s0 + $0x198] sm:$0xff]  ;;  %v66_v23 = vld [vmem:[%s3049_s0 + $0x190] sm:$0xff] }
  0x8b   :  { %vm1879_vm8 = vmpackc.low %vm535_vm6, %vm534_vm7  ;;  %249 = vperm.xlu0 %2240, %v50_v20  }
  0x8c   :  { %2095 = vmatprep.mubr.msk.bf16.mxu0 %vm1879_vm8, %v2275_v21 }
  0x8d   :  { %v169_v26 = vpop.permute.xlu1 %168  ;;  %v166_v27 = vpop.permute.xlu0 %165 }
  0x8e   :  { %vm537_vm9 = vcmp.eq.s32.totalorder %v169_v26, %v2521_v14  ;;  %vm536_vm10 = vcmp.eq.s32.totalorder %v166_v27, %v2521_v14  ;;  %444 = vperm.xlu1 %2241, %v115_v24   ;;  %v131_v26 = vld [vmem:[%s3049_s0 + $0x398] sm:$0xff]  ;;  %v130_v27 = vld [vmem:[%s3049_s0 + $0x390] sm:$0xff] }
  0x8f   :  { %vm1881_vm11 = vmpackc.low %vm537_vm9, %vm536_vm10  ;;  %441 = vperm.xlu0 %2240, %v114_v25  }
  0x91   :  { %v175_v30 = vpop.permute.xlu1 %174  ;;  %v172_v31 = vpop.permute.xlu0 %171 }
  0x92   :  { %vm539_vm12 = vcmp.eq.s32.totalorder %v175_v30, %v2521_v14  ;;  %2096 = vmatmul.mubr.msk.bf16.gmra.mrb[4].mxu0 %vm1881_vm11, %v2275_v21  ;;  %vm538_vm13 = vcmp.eq.s32.totalorder %v172_v31, %v2521_v14  ;;  %258 = vperm.xlu1 %2241, %v53_v28   ;;  %v69_v30 = vld [vmem:[%s3049_s0 + $0x1a8] sm:$0xff]  ;;  %v68_v31 = vld [vmem:[%s3049_s0 + $0x1a0] sm:$0xff] }
  0x93   :  { %vm1883_vm14 = vmpackc.low %vm539_vm12, %vm538_vm13  ;;  %255 = vperm.xlu0 %2240, %v52_v29  }
  0x94   :  { %2099 = vmatprep.mubr.msk.bf16.mxu0 %vm1883_vm14, %v2275_v21 }
  0x95   :  { %v181_v34 = vpop.permute.xlu1 %180  ;;  %v178_v35 = vpop.permute.xlu0 %177 }
  0x96   :  { %vm541_vm15 = vcmp.eq.s32.totalorder %v181_v34, %v2521_v14  ;;  %vm540_vm0 = vcmp.eq.s32.totalorder %v178_v35, %v2521_v14  ;;  %450 = vperm.xlu1 %2241, %v117_v32   ;;  %v133_v34 = vld [vmem:[%s3049_s0 + $0x3a8] sm:$0xff]  ;;  %v132_v35 = vld [vmem:[%s3049_s0 + $0x3a0] sm:$0xff] }
  0x97   :  { %vm1885_vm1 = vmpackc.low %vm541_vm15, %vm540_vm0  ;;  %447 = vperm.xlu0 %2240, %v116_v33  }
  0x99   :  { %v187_v38 = vpop.permute.xlu1 %186  ;;  %v184_v39 = vpop.permute.xlu0 %183 }
  0x9a   :  { %vm543_vm2 = vcmp.eq.s32.totalorder %v187_v38, %v2521_v14  ;;  %2100 = vmatmul.mubr.msk.bf16.gmra.mrb[8].mxu0 %vm1885_vm1, %v2275_v21  ;;  %vm542_vm3 = vcmp.eq.s32.totalorder %v184_v39, %v2521_v14  ;;  %264 = vperm.xlu1 %2241, %v55_v36   ;;  %v71_v38 = vld [vmem:[%s3049_s0 + $0x1b8] sm:$0xff]  ;;  %v70_v39 = vld [vmem:[%s3049_s0 + $0x1b0] sm:$0xff] }
  0x9b   :  { %vm1887_vm4 = vmpackc.low %vm543_vm2, %vm542_vm3  ;;  %261 = vperm.xlu0 %2240, %v54_v37  }
  0x9c   :  { %2103 = vmatprep.mubr.msk.bf16.mxu0 %vm1887_vm4, %v2275_v21 }
  0x9d   :  { %v193_v42 = vpop.permute.xlu1 %192  ;;  %v190_v43 = vpop.permute.xlu0 %189 }
  0x9e   :  { %vm545_vm5 = vcmp.eq.s32.totalorder %v193_v42, %v2521_v14  ;;  %vm544_vm6 = vcmp.eq.s32.totalorder %v190_v43, %v2521_v14  ;;  %456 = vperm.xlu1 %2241, %v119_v40   ;;  %v135_v42 = vld [vmem:[%s3049_s0 + $0x3b8] sm:$0xff]  ;;  %v134_v43 = vld [vmem:[%s3049_s0 + $0x3b0] sm:$0xff] }
  0x9f   :  { %vm1889_vm7 = vmpackc.low %vm545_vm5, %vm544_vm6  ;;  %453 = vperm.xlu0 %2240, %v118_v41  }
  0xa1   :  { %v199_v46 = vpop.permute.xlu1 %198  ;;  %v196_v47 = vpop.permute.xlu0 %195 }
  0xa2   :  { %vm547_vm8 = vcmp.eq.s32.totalorder %v199_v46, %v2521_v14  ;;  %2104 = vmatmul.mubr.msk.bf16.gmra.mrb[12].mxu0 %vm1889_vm7, %v2275_v21  ;;  %vm546_vm9 = vcmp.eq.s32.totalorder %v196_v47, %v2521_v14  ;;  %270 = vperm.xlu1 %2241, %v57_v44   ;;  %v73_v46 = vld [vmem:[%s3049_s0 + $0x1c8] sm:$0xff]  ;;  %v72_v47 = vld [vmem:[%s3049_s0 + $0x1c0] sm:$0xff] }
  0xa3   :  { %vm1891_vm10 = vmpackc.low %vm547_vm8, %vm546_vm9  ;;  %267 = vperm.xlu0 %2240, %v56_v45  }
  0xa4   :  { %2107 = vmatprep.mubr.msk.bf16.mxu0 %vm1891_vm10, %v2275_v21 }
  0xa5   :  { %v205_v50 = vpop.permute.xlu1 %204  ;;  %v202_v51 = vpop.permute.xlu0 %201 }
  0xa6   :  { %vm549_vm11 = vcmp.eq.s32.totalorder %v205_v50, %v2521_v14  ;;  %vm548_vm12 = vcmp.eq.s32.totalorder %v202_v51, %v2521_v14  ;;  %462 = vperm.xlu1 %2241, %v121_v48   ;;  %v137_v50 = vld [vmem:[%s3049_s0 + $0x3c8] sm:$0xff]  ;;  %v136_v51 = vld [vmem:[%s3049_s0 + $0x3c0] sm:$0xff] }
  0xa7   :  { %vm1893_vm13 = vmpackc.low %vm549_vm11, %vm548_vm12  ;;  %459 = vperm.xlu0 %2240, %v120_v49  }
  0xa9   :  { %v211_v54 = vpop.permute.xlu1 %210  ;;  %v208_v55 = vpop.permute.xlu0 %207 }
  0xaa   :  { %vm551_vm14 = vcmp.eq.s32.totalorder %v211_v54, %v2521_v14  ;;  %2108 = vmatmul.mubr.msk.bf16.gmra.mrb[16].mxu0 %vm1893_vm13, %v2275_v21  ;;  %vm550_vm15 = vcmp.eq.s32.totalorder %v208_v55, %v2521_v14  ;;  %276 = vperm.xlu1 %2241, %v59_v52   ;;  %v75_v54 = vld [vmem:[%s3049_s0 + $0x1d8] sm:$0xff]  ;;  %v74_v55 = vld [vmem:[%s3049_s0 + $0x1d0] sm:$0xff] }
  0xab   :  { %vm1895_vm0 = vmpackc.low %vm551_vm14, %vm550_vm15  ;;  %273 = vperm.xlu0 %2240, %v58_v53  }
  0xac   :  { %2111 = vmatprep.mubr.msk.bf16.mxu0 %vm1895_vm0, %v2275_v21 }
  0xad   :  { %v217_v58 = vpop.permute.xlu1 %216  ;;  %v214_v59 = vpop.permute.xlu0 %213 }
  0xae   :  { %vm553_vm1 = vcmp.eq.s32.totalorder %v217_v58, %v2521_v14  ;;  %vm552_vm2 = vcmp.eq.s32.totalorder %v214_v59, %v2521_v14  ;;  %468 = vperm.xlu1 %2241, %v123_v56   ;;  %v139_v58 = vld [vmem:[%s3049_s0 + $0x3d8] sm:$0xff]  ;;  %v138_v59 = vld [vmem:[%s3049_s0 + $0x3d0] sm:$0xff] }
  0xaf   :  { %vm1897_vm3 = vmpackc.low %vm553_vm1, %vm552_vm2  ;;  %465 = vperm.xlu0 %2240, %v122_v57  }
  0xb1   :  { %v223_v62 = vpop.permute.xlu1 %222  ;;  %v220_v63 = vpop.permute.xlu0 %219 }
  0xb2   :  { %vm555_vm4 = vcmp.eq.s32.totalorder %v223_v62, %v2521_v14  ;;  %2112 = vmatmul.mubr.msk.bf16.gmra.mrb[20].mxu0 %vm1897_vm3, %v2275_v21  ;;  %vm554_vm5 = vcmp.eq.s32.totalorder %v220_v63, %v2521_v14  ;;  %282 = vperm.xlu1 %2241, %v61_v60   ;;  %v77_v62 = vld [vmem:[%s3049_s0 + $0x1e8] sm:$0xff]  ;;  %v76_v63 = vld [vmem:[%s3049_s0 + $0x1e0] sm:$0xff] }
  0xb3   :  { %vm1899_vm6 = vmpackc.low %vm555_vm4, %vm554_vm5  ;;  %279 = vperm.xlu0 %2240, %v60_v61  }
  0xb4   :  { %2115 = vmatprep.mubr.msk.bf16.mxu0 %vm1899_vm6, %v2275_v21 }
  0xb5   :  { %v340_v2 = vpop.permute.xlu1 %339  ;;  %v2640_v3 = vpop.permute.xlu0 %225 }
  0xb6   :  { %474 = vperm.xlu1 %2241, %v125_v0   ;;  %vm594_vm7 = vcmp.eq.s32.totalorder %v340_v2, %v2521_v14  ;;  %v141_v2 = vld [vmem:[%s3049_s0 + $0x3e8] sm:$0xff] }
  0xb7   :  { %471 = vperm.xlu0 %2240, %v124_v1  }
  0xb9   :  { %v346_v6 = vpop.permute.xlu1 %345  ;;  %v343_v7 = vpop.permute.xlu0 %342 }
  0xba   :  { %288 = vperm.xlu1 %2241, %v63_v4   ;;  %vm595_vm8 = vcmp.eq.s32.totalorder %v343_v7, %v2521_v14  ;;  %vm596_vm10 = vcmp.eq.s32.totalorder %v346_v6, %v2521_v14  ;;  %v79_v6 = vld [vmem:[%s3049_s0 + $0x1f8] sm:$0xff]  ;;  %v78_v7 = vld [vmem:[%s3049_s0 + $0x1f0] sm:$0xff] }
  0xbb   :  { %285 = vperm.xlu0 %2240, %v62_v5   ;;  %vm1939_vm9 = vmpackc.low %vm595_vm8, %vm594_vm7 }
  0xbc   :  { %2155 = vmatprep.mubr.msk.bf16.mxu1 %vm1939_vm9, %v2275_v21 }
  0xbd   :  { %v352_v10 = vpop.permute.xlu1 %351  ;;  %v349_v11 = vpop.permute.xlu0 %348 }
  0xbe   :  { %vm597_vm11 = vcmp.eq.s32.totalorder %v349_v11, %v2521_v14  ;;  %480 = vperm.xlu1 %2241, %v127_v8   ;;  %vm598_vm13 = vcmp.eq.s32.totalorder %v352_v10, %v2521_v14  ;;  %v143_v10 = vld [vmem:[%s3049_s0 + $0x3f8] sm:$0xff]  ;;  %v142_v11 = vld [vmem:[%s3049_s0 + $0x3f0] sm:$0xff] }
  0xbf   :  { %vm1941_vm12 = vmpackc.low %vm597_vm11, %vm596_vm10  ;;  %477 = vperm.xlu0 %2240, %v126_v9  }
  0xc0   :  { %2156 = vmatmul.mubr.msk.bf16.vlgmr.msra.gmra.mrb[0].mxu1 %vm1941_vm12, %v2275_v21 }
  0xc1   :  { %v358_v15 = vpop.permute.xlu1 %357  ;;  %v355_v16 = vpop.permute.xlu0 %354 }
  0xc2   :  { %vm599_vm14 = vcmp.eq.s32.totalorder %v355_v16, %v2521_v14  ;;  %294 = vperm.xlu1 %2241, %v65_v12   ;;  %vm600_vm0 = vcmp.eq.s32.totalorder %v358_v15, %v2521_v14 }
  0xc3   :  { %vm1943_vm15 = vmpackc.low %vm599_vm14, %vm598_vm13  ;;  %291 = vperm.xlu0 %2240, %v64_v13  }
  0xc4   :  { %2159 = vmatprep.mubr.msk.bf16.mxu1 %vm1943_vm15, %v2275_v21 }
  0xc5   :  { %v364_v19 = vpop.permute.xlu1 %363  ;;  %v361_v20 = vpop.permute.xlu0 %360 }
  0xc6   :  { %vm601_vm1 = vcmp.eq.s32.totalorder %v361_v20, %v2521_v14  ;;  %486 = vperm.xlu1 %2241, %v129_v17   ;;  %vm602_vm3 = vcmp.eq.s32.totalorder %v364_v19, %v2521_v14 }
  0xc7   :  { %vm1945_vm2 = vmpackc.low %vm601_vm1, %vm600_vm0  ;;  %483 = vperm.xlu0 %2240, %v128_v18  }
  0xc8   :  { %2160 = vmatmul.mubr.msk.bf16.gmra.mrb[4].mxu1 %vm1945_vm2, %v2275_v21 }
  0xc9   :  { %v370_v24 = vpop.permute.xlu1 %369  ;;  %v367_v25 = vpop.permute.xlu0 %366 }
  0xca   :  { %vm603_vm4 = vcmp.eq.s32.totalorder %v367_v25, %v2521_v14  ;;  %300 = vperm.xlu1 %2241, %v67_v22   ;;  %vm604_vm6 = vcmp.eq.s32.totalorder %v370_v24, %v2521_v14 }
  0xcb   :  { %vm1947_vm5 = vmpackc.low %vm603_vm4, %vm602_vm3  ;;  %297 = vperm.xlu0 %2240, %v66_v23  }
  0xcc   :  { %2163 = vmatprep.mubr.msk.bf16.mxu1 %vm1947_vm5, %v2275_v21 }
  0xcd   :  { %v376_v28 = vpop.permute.xlu1 %375  ;;  %v373_v29 = vpop.permute.xlu0 %372 }
  0xce   :  { %vm605_vm7 = vcmp.eq.s32.totalorder %v373_v29, %v2521_v14  ;;  %492 = vperm.xlu1 %2241, %v131_v26   ;;  %vm606_vm9 = vcmp.eq.s32.totalorder %v376_v28, %v2521_v14 }
  0xcf   :  { %vm1949_vm8 = vmpackc.low %vm605_vm7, %vm604_vm6  ;;  %489 = vperm.xlu0 %2240, %v130_v27  }
  0xd0   :  { %2164 = vmatmul.mubr.msk.bf16.gmra.mrb[8].mxu1 %vm1949_vm8, %v2275_v21 }
  0xd1   :  { %v382_v32 = vpop.permute.xlu1 %381  ;;  %v379_v33 = vpop.permute.xlu0 %378 }
  0xd2   :  { %vm607_vm10 = vcmp.eq.s32.totalorder %v379_v33, %v2521_v14  ;;  %306 = vperm.xlu1 %2241, %v69_v30   ;;  %vm608_vm12 = vcmp.eq.s32.totalorder %v382_v32, %v2521_v14 }
  0xd3   :  { %vm1951_vm11 = vmpackc.low %vm607_vm10, %vm606_vm9  ;;  %303 = vperm.xlu0 %2240, %v68_v31  }
  0xd4   :  { %2167 = vmatprep.mubr.msk.bf16.mxu1 %vm1951_vm11, %v2275_v21  ;;  %vm556_vm11 = vcmp.eq.s32.totalorder %v2640_v3, %v2521_v14  ;;  %v140_v3 = vld [vmem:[%s3049_s0 + $0x3e0] sm:$0xff] }
  0xd5   :  { %v388_v36 = vpop.permute.xlu1 %387  ;;  %v385_v37 = vpop.permute.xlu0 %384 }
  0xd6   :  { %vm609_vm13 = vcmp.eq.s32.totalorder %v385_v37, %v2521_v14  ;;  %498 = vperm.xlu1 %2241, %v133_v34   ;;  %vm610_vm15 = vcmp.eq.s32.totalorder %v388_v36, %v2521_v14 }
  0xd7   :  { %vm1953_vm14 = vmpackc.low %vm609_vm13, %vm608_vm12  ;;  %495 = vperm.xlu0 %2240, %v132_v35  }
  0xd8   :  { %2168 = vmatmul.mubr.msk.bf16.gmra.mrb[12].mxu1 %vm1953_vm14, %v2275_v21 }
  0xd9   :  { %v394_v40 = vpop.permute.xlu1 %393  ;;  %v391_v41 = vpop.permute.xlu0 %390 }
  0xda   :  { %vm611_vm0 = vcmp.eq.s32.totalorder %v391_v41, %v2521_v14  ;;  %312 = vperm.xlu1 %2241, %v71_v38   ;;  %vm612_vm2 = vcmp.eq.s32.totalorder %v394_v40, %v2521_v14 }
  0xdb   :  { %vm1955_vm1 = vmpackc.low %vm611_vm0, %vm610_vm15  ;;  %309 = vperm.xlu0 %2240, %v70_v39  }
  0xdc   :  { %2171 = vmatprep.mubr.msk.bf16.mxu1 %vm1955_vm1, %v2275_v21 }
  0xdd   :  { %v400_v44 = vpop.permute.xlu1 %399  ;;  %v397_v45 = vpop.permute.xlu0 %396 }
  0xde   :  { %vm613_vm3 = vcmp.eq.s32.totalorder %v397_v45, %v2521_v14  ;;  %504 = vperm.xlu1 %2241, %v135_v42   ;;  %vm614_vm5 = vcmp.eq.s32.totalorder %v400_v44, %v2521_v14 }
  0xdf   :  { %vm1957_vm4 = vmpackc.low %vm613_vm3, %vm612_vm2  ;;  %501 = vperm.xlu0 %2240, %v134_v43  }
  0xe0   :  { %2172 = vmatmul.mubr.msk.bf16.gmra.mrb[16].mxu1 %vm1957_vm4, %v2275_v21 }
  0xe1   :  { %v406_v48 = vpop.permute.xlu1 %405  ;;  %v403_v49 = vpop.permute.xlu0 %402 }
  0xe2   :  { %vm615_vm6 = vcmp.eq.s32.totalorder %v403_v49, %v2521_v14  ;;  %318 = vperm.xlu1 %2241, %v73_v46   ;;  %vm616_vm8 = vcmp.eq.s32.totalorder %v406_v48, %v2521_v14 }
  0xe3   :  { %vm1959_vm7 = vmpackc.low %vm615_vm6, %vm614_vm5  ;;  %315 = vperm.xlu0 %2240, %v72_v47  }
  0xe4   :  { %2175 = vmatprep.mubr.msk.bf16.mxu1 %vm1959_vm7, %v2275_v21 }
  0xe5   :  { %v412_v52 = vpop.permute.xlu1 %411  ;;  %v409_v53 = vpop.permute.xlu0 %408 }
  0xe6   :  { %vm617_vm9 = vcmp.eq.s32.totalorder %v409_v53, %v2521_v14  ;;  %510 = vperm.xlu1 %2241, %v137_v50   ;;  %vm618_vm14 = vcmp.eq.s32.totalorder %v412_v52, %v2521_v14 }
  0xe7   :  { %vm1961_vm10 = vmpackc.low %vm617_vm9, %vm616_vm8  ;;  %507 = vperm.xlu0 %2240, %v136_v51  }
  0xe8   :  { %2176 = vmatmul.mubr.msk.bf16.gmra.mrb[20].mxu1 %vm1961_vm10, %v2275_v21 }
  0xe9   :  { %v229_v56 = vpop.permute.xlu1 %228  ;;  %v415_v57 = vpop.permute.xlu0 %414 }
  0xea   :  { %vm557_vm12 = vcmp.eq.s32.totalorder %v229_v56, %v2521_v14  ;;  %vm619_vm13 = vcmp.eq.s32.totalorder %v415_v57, %v2521_v14  ;;  %324 = vperm.xlu1 %2241, %v75_v54  }
  0xeb   :  { %vm1901_vm15 = vmpackc.low %vm557_vm12, %vm556_vm11  ;;  %321 = vperm.xlu0 %2240, %v74_v55  }
  0xec   :  { %vm1963_vm0 = vmpackc.low %vm619_vm13, %vm618_vm14  ;;  %2116 = vmatmul.mubr.msk.bf16.gmra.mrb[24].mxu0 %vm1901_vm15, %v2275_v21 }
  0xed   :  { %2179 = vmatprep.mubr.msk.bf16.mxu1 %vm1963_vm0, %v2275_v21  ;;  %v421_v60 = vpop.permute.xlu1 %420  ;;  %v418_v61 = vpop.permute.xlu0 %417 }
  0xee   :  { %vm621_vm1 = vcmp.eq.s32.totalorder %v421_v60, %v2521_v14  ;;  %vm620_vm2 = vcmp.eq.s32.totalorder %v418_v61, %v2521_v14  ;;  %516 = vperm.xlu1 %2241, %v139_v58  }
  0xef   :  { %vm1965_vm3 = vmpackc.low %vm621_vm1, %vm620_vm2  ;;  %513 = vperm.xlu0 %2240, %v138_v59  }
  0xf0   :  { %2180 = vmatmul.mubr.msk.bf16.gmra.mrb[24].mxu1 %vm1965_vm3, %v2275_v21 }
  0xf1   :  { %v235_v0 = vpop.permute.xlu1 %234  ;;  %v232_v1 = vpop.permute.xlu0 %231 }
  0xf2   :  { %vm559_vm4 = vcmp.eq.s32.totalorder %v235_v0, %v2521_v14  ;;  %vm558_vm5 = vcmp.eq.s32.totalorder %v232_v1, %v2521_v14  ;;  %330 = vperm.xlu1 %2241, %v77_v62   ;;  %v2879_v62 = vld [vmem:[%s3051_s2] ss:$0 sm:$0xff]  ;;  %s2276_s2 = smov [#allocation2]  }
  0xf3   :  { %vm1903_vm6 = vmpackc.low %vm559_vm4, %vm558_vm5  ;;  %327 = vperm.xlu0 %2240, %v76_v63   ;;  %s1727_s7 = sshll.u32 %s2276_s2, 4  ;;  %s1728_s7 = int_to_ptr.vmem [resolvable:$true] %s1727_s7 }
  0xf4   :  { %2119 = vmatprep.mubr.msk.bf16.mxu0 %vm1903_vm6, %v2275_v21  ;;  %s2250_s8 = scalar_lea.vmem %s1728_s7, 16384  ;;  %p2255_p1 = scmp.lt.s32.totalorder %s1728_s7, %s1728_s7 }
  0xf5   :  { %v427_v4 = vpop.permute.xlu1 %426  ;;  %v424_v5 = vpop.permute.xlu0 %423  ;;  %p2251_p0 = scmp.ne.s32.totalorder %s1728_s7, %s2250_s8  ;;  %p2256_p2 = scmp.lt.s32.totalorder %s2250_s8, %s2250_s8 }
  0xf6   :  { %vm623_vm7 = vcmp.eq.s32.totalorder %v427_v4, %v2521_v14  ;;  %vm622_vm8 = vcmp.eq.s32.totalorder %v424_v5, %v2521_v14  ;;  %522 = vperm.xlu1 %2241, %v141_v2  }
  0xf7   :  { %vm1967_vm9 = vmpackc.low %vm623_vm7, %vm622_vm8  ;;  %519 = vperm.xlu0 %2240, %v140_v3   ;;  %p2257_p3 = por %p2256_p2, %p2255_p1 }
  0xf8   :  { %2183 = vmatprep.mubr.msk.bf16.mxu1 %vm1967_vm9, %v2275_v21 }
  0xf9   :  { %v241_v8 = vpop.permute.xlu1 %240  ;;  %v238_v9 = vpop.permute.xlu0 %237  ;;  %p2258_p4 = pnand %p2257_p3, %p2251_p0 }
  0xfa   :  { %vm561_vm10 = vcmp.eq.s32.totalorder %v241_v8, %v2521_v14  ;;  %vm560_vm11 = vcmp.eq.s32.totalorder %v238_v9, %v2521_v14  ;;  %336 = vperm.xlu1 %2241, %v79_v6  }
  0xfb   :  { %vm1905_vm12 = vmpackc.low %vm561_vm10, %vm560_vm11  ;;  %333 = vperm.xlu0 %2240, %v78_v7  }
  0xfc   :  { %2120 = vmatmul.mubr.msk.bf16.gmra.mrb[28].mxu0 %vm1905_vm12, %v2275_v21 }
  0xfd   :  { %v433_v12 = vpop.permute.xlu1 %432  ;;  %v430_v13 = vpop.permute.xlu0 %429 }
  0xfe   :  { %vm625_vm13 = vcmp.eq.s32.totalorder %v433_v12, %v2521_v14  ;;  %vm624_vm14 = vcmp.eq.s32.totalorder %v430_v13, %v2521_v14  ;;  %528 = vperm.xlu1 %2241, %v143_v10  }
  0xff   :  { %vm1969_vm15 = vmpackc.low %vm625_vm13, %vm624_vm14  ;;  %525 = vperm.xlu0 %2240, %v142_v11  }
 0x100   :  { %2184 = vmatmul.mubr.msk.bf16.gmra.mrb[28].mxu1 %vm1969_vm15, %v2275_v21 }
 0x101   :  { %v247_v15 = vpop.permute.xlu1 %246  ;;  %v244_v16 = vpop.permute.xlu0 %243 }
 0x102   :  { %vm563_vm0 = vcmp.eq.s32.totalorder %v247_v15, %v2521_v14  ;;  %vm562_vm1 = vcmp.eq.s32.totalorder %v244_v16, %v2521_v14 }
 0x103   :  { %vm1907_vm2 = vmpackc.low %vm563_vm0, %vm562_vm1 }
 0x104   :  { %2123 = vmatprep.mubr.msk.bf16.mxu0 %vm1907_vm2, %v2275_v21 }
 0x105   :  { %v439_v17 = vpop.permute.xlu1 %438  ;;  %v436_v18 = vpop.permute.xlu0 %435 }
 0x106   :  { %vm627_vm3 = vcmp.eq.s32.totalorder %v439_v17, %v2521_v14  ;;  %vm626_vm4 = vcmp.eq.s32.totalorder %v436_v18, %v2521_v14 }
 0x107   :  { %vm1971_vm5 = vmpackc.low %vm627_vm3, %vm626_vm4 }
 0x108   :  { %2187 = vmatprep.mubr.msk.bf16.mxu1 %vm1971_vm5, %v2275_v21 }
 0x109   :  { %v253_v19 = vpop.permute.xlu1 %252 }
 0x10a   :  { %vm565_vm6 = vcmp.eq.s32.totalorder %v253_v19, %v2521_v14  ;;  %v250_v20 = vpop.permute.xlu0 %249 }
 0x10b   :  { %vm564_vm7 = vcmp.eq.s32.totalorder %v250_v20, %v2521_v14 }
 0x10c   :  { %vm1909_vm8 = vmpackc.low %vm565_vm6, %vm564_vm7 }
 0x10d   :  { %2124 = vmatmul.mubr.msk.bf16.gmra.mrb[32].mxu0 %vm1909_vm8, %v2275_v21  ;;  %v445_v22 = vpop.permute.xlu1 %444 }
 0x10e   :  { %vm629_vm9 = vcmp.eq.s32.totalorder %v445_v22, %v2521_v14  ;;  %v442_v23 = vpop.permute.xlu0 %441 }
 0x10f   :  { %vm628_vm10 = vcmp.eq.s32.totalorder %v442_v23, %v2521_v14 }
 0x110   :  { %vm1973_vm11 = vmpackc.low %vm629_vm9, %vm628_vm10 }
 0x111   :  { %2188 = vmatmul.mubr.msk.bf16.gmra.mrb[32].mxu1 %vm1973_vm11, %v2275_v21  ;;  %v259_v24 = vpop.permute.xlu1 %258 }
 0x112   :  { %vm567_vm12 = vcmp.eq.s32.totalorder %v259_v24, %v2521_v14  ;;  %v256_v25 = vpop.permute.xlu0 %255 }
 0x113   :  { %vm566_vm13 = vcmp.eq.s32.totalorder %v256_v25, %v2521_v14 }
 0x114   :  { %vm1911_vm14 = vmpackc.low %vm567_vm12, %vm566_vm13 }
 0x115   :  { %2127 = vmatprep.mubr.msk.bf16.mxu0 %vm1911_vm14, %v2275_v21  ;;  %v451_v26 = vpop.permute.xlu1 %450 }
 0x116   :  { %vm631_vm15 = vcmp.eq.s32.totalorder %v451_v26, %v2521_v14  ;;  %v448_v27 = vpop.permute.xlu0 %447 }
 0x117   :  { %vm630_vm0 = vcmp.eq.s32.totalorder %v448_v27, %v2521_v14 }
 0x118   :  { %vm1975_vm1 = vmpackc.low %vm631_vm15, %vm630_vm0 }
 0x119   :  { %2191 = vmatprep.mubr.msk.bf16.mxu1 %vm1975_vm1, %v2275_v21  ;;  %v265_v28 = vpop.permute.xlu1 %264 }
 0x11a   :  { %vm569_vm2 = vcmp.eq.s32.totalorder %v265_v28, %v2521_v14  ;;  %v262_v29 = vpop.permute.xlu0 %261 }
 0x11b   :  { %vm568_vm3 = vcmp.eq.s32.totalorder %v262_v29, %v2521_v14 }
 0x11c   :  { %vm1913_vm4 = vmpackc.low %vm569_vm2, %vm568_vm3 }
 0x11d   :  { %2128 = vmatmul.mubr.msk.bf16.gmra.mrb[36].mxu0 %vm1913_vm4, %v2275_v21  ;;  %v457_v30 = vpop.permute.xlu1 %456 }
 0x11e   :  { %vm633_vm5 = vcmp.eq.s32.totalorder %v457_v30, %v2521_v14  ;;  %v454_v31 = vpop.permute.xlu0 %453 }
 0x11f   :  { %vm632_vm6 = vcmp.eq.s32.totalorder %v454_v31, %v2521_v14 }
 0x120   :  { %vm1977_vm7 = vmpackc.low %vm633_vm5, %vm632_vm6 }
 0x121   :  { %2192 = vmatmul.mubr.msk.bf16.gmra.mrb[36].mxu1 %vm1977_vm7, %v2275_v21  ;;  %v271_v32 = vpop.permute.xlu1 %270 }
 0x122   :  { %vm571_vm8 = vcmp.eq.s32.totalorder %v271_v32, %v2521_v14  ;;  %v268_v33 = vpop.permute.xlu0 %267 }
 0x123   :  { %vm570_vm9 = vcmp.eq.s32.totalorder %v268_v33, %v2521_v14 }
 0x124   :  { %vm1915_vm10 = vmpackc.low %vm571_vm8, %vm570_vm9 }
 0x125   :  { %2131 = vmatprep.mubr.msk.bf16.mxu0 %vm1915_vm10, %v2275_v21  ;;  %v463_v34 = vpop.permute.xlu1 %462 }
 0x126   :  { %vm635_vm11 = vcmp.eq.s32.totalorder %v463_v34, %v2521_v14  ;;  %v460_v35 = vpop.permute.xlu0 %459 }
 0x127   :  { %vm634_vm12 = vcmp.eq.s32.totalorder %v460_v35, %v2521_v14 }
 0x128   :  { %vm1979_vm13 = vmpackc.low %vm635_vm11, %vm634_vm12 }
 0x129   :  { %2195 = vmatprep.mubr.msk.bf16.mxu1 %vm1979_vm13, %v2275_v21  ;;  %v277_v36 = vpop.permute.xlu1 %276 }
 0x12a   :  { %vm573_vm14 = vcmp.eq.s32.totalorder %v277_v36, %v2521_v14  ;;  %v274_v37 = vpop.permute.xlu0 %273 }
 0x12b   :  { %vm572_vm15 = vcmp.eq.s32.totalorder %v274_v37, %v2521_v14 }
 0x12c   :  { %vm1917_vm0 = vmpackc.low %vm573_vm14, %vm572_vm15 }
 0x12d   :  { %2132 = vmatmul.mubr.msk.bf16.gmra.mrb[40].mxu0 %vm1917_vm0, %v2275_v21  ;;  %v469_v38 = vpop.permute.xlu1 %468 }
 0x12e   :  { %vm637_vm1 = vcmp.eq.s32.totalorder %v469_v38, %v2521_v14  ;;  %v466_v39 = vpop.permute.xlu0 %465 }
 0x12f   :  { %vm636_vm2 = vcmp.eq.s32.totalorder %v466_v39, %v2521_v14 }
 0x130   :  { %vm1981_vm3 = vmpackc.low %vm637_vm1, %vm636_vm2 }
 0x131   :  { %2196 = vmatmul.mubr.msk.bf16.gmra.mrb[40].mxu1 %vm1981_vm3, %v2275_v21  ;;  %v283_v40 = vpop.permute.xlu1 %282 }
 0x132   :  { %vm575_vm4 = vcmp.eq.s32.totalorder %v283_v40, %v2521_v14  ;;  %v280_v41 = vpop.permute.xlu0 %279 }
 0x133   :  { %vm574_vm5 = vcmp.eq.s32.totalorder %v280_v41, %v2521_v14 }
 0x134   :  { %vm1919_vm6 = vmpackc.low %vm575_vm4, %vm574_vm5 }
 0x135   :  { %2135 = vmatprep.mubr.msk.bf16.mxu0 %vm1919_vm6, %v2275_v21  ;;  %v475_v42 = vpop.permute.xlu1 %474 }
 0x136   :  { %vm639_vm7 = vcmp.eq.s32.totalorder %v475_v42, %v2521_v14  ;;  %v472_v43 = vpop.permute.xlu0 %471 }
 0x137   :  { %vm638_vm8 = vcmp.eq.s32.totalorder %v472_v43, %v2521_v14 }
 0x138   :  { %vm1983_vm9 = vmpackc.low %vm639_vm7, %vm638_vm8 }
 0x139   :  { %2199 = vmatprep.mubr.msk.bf16.mxu1 %vm1983_vm9, %v2275_v21  ;;  %v289_v44 = vpop.permute.xlu1 %288 }
 0x13a   :  { %vm577_vm10 = vcmp.eq.s32.totalorder %v289_v44, %v2521_v14  ;;  %v286_v45 = vpop.permute.xlu0 %285 }
 0x13b   :  { %vm576_vm11 = vcmp.eq.s32.totalorder %v286_v45, %v2521_v14 }
 0x13c   :  { %vm1921_vm12 = vmpackc.low %vm577_vm10, %vm576_vm11 }
 0x13d   :  { %2136 = vmatmul.mubr.msk.bf16.gmra.mrb[44].mxu0 %vm1921_vm12, %v2275_v21  ;;  %v481_v46 = vpop.permute.xlu1 %480 }
 0x13e   :  { %vm641_vm13 = vcmp.eq.s32.totalorder %v481_v46, %v2521_v14  ;;  %v478_v47 = vpop.permute.xlu0 %477 }
 0x13f   :  { %vm640_vm14 = vcmp.eq.s32.totalorder %v478_v47, %v2521_v14 }
 0x140   :  { %vm1985_vm15 = vmpackc.low %vm641_vm13, %vm640_vm14 }
 0x141   :  { %2200 = vmatmul.mubr.msk.bf16.gmra.mrb[44].mxu1 %vm1985_vm15, %v2275_v21  ;;  %v295_v48 = vpop.permute.xlu1 %294 }
 0x142   :  { %vm579_vm0 = vcmp.eq.s32.totalorder %v295_v48, %v2521_v14  ;;  %v292_v49 = vpop.permute.xlu0 %291 }
 0x143   :  { %vm578_vm1 = vcmp.eq.s32.totalorder %v292_v49, %v2521_v14 }
 0x144   :  { %vm1923_vm2 = vmpackc.low %vm579_vm0, %vm578_vm1 }
 0x145   :  { %2139 = vmatprep.mubr.msk.bf16.mxu0 %vm1923_vm2, %v2275_v21  ;;  %v487_v50 = vpop.permute.xlu1 %486 }
 0x146   :  { %vm643_vm3 = vcmp.eq.s32.totalorder %v487_v50, %v2521_v14  ;;  %v484_v51 = vpop.permute.xlu0 %483 }
 0x147   :  { %vm642_vm4 = vcmp.eq.s32.totalorder %v484_v51, %v2521_v14 }
 0x148   :  { %vm1987_vm5 = vmpackc.low %vm643_vm3, %vm642_vm4 }
 0x149   :  { %2203 = vmatprep.mubr.msk.bf16.mxu1 %vm1987_vm5, %v2275_v21  ;;  %v301_v52 = vpop.permute.xlu1 %300 }
 0x14a   :  { %vm581_vm6 = vcmp.eq.s32.totalorder %v301_v52, %v2521_v14  ;;  %v298_v53 = vpop.permute.xlu0 %297 }
 0x14b   :  { %vm580_vm7 = vcmp.eq.s32.totalorder %v298_v53, %v2521_v14 }
 0x14c   :  { %vm1925_vm8 = vmpackc.low %vm581_vm6, %vm580_vm7 }
 0x14d   :  { %2140 = vmatmul.mubr.msk.bf16.gmra.mrb[48].mxu0 %vm1925_vm8, %v2275_v21  ;;  %v493_v54 = vpop.permute.xlu1 %492 }
 0x14e   :  { %vm645_vm9 = vcmp.eq.s32.totalorder %v493_v54, %v2521_v14  ;;  %v490_v55 = vpop.permute.xlu0 %489 }
 0x14f   :  { %vm644_vm10 = vcmp.eq.s32.totalorder %v490_v55, %v2521_v14 }
 0x150   :  { %vm1989_vm11 = vmpackc.low %vm645_vm9, %vm644_vm10 }
 0x151   :  { %2204 = vmatmul.mubr.msk.bf16.gmra.mrb[48].mxu1 %vm1989_vm11, %v2275_v21  ;;  %v307_v56 = vpop.permute.xlu1 %306 }
 0x152   :  { %vm583_vm12 = vcmp.eq.s32.totalorder %v307_v56, %v2521_v14  ;;  %v304_v57 = vpop.permute.xlu0 %303 }
 0x153   :  { %vm582_vm13 = vcmp.eq.s32.totalorder %v304_v57, %v2521_v14 }
 0x154   :  { %vm1927_vm14 = vmpackc.low %vm583_vm12, %vm582_vm13 }
 0x155   :  { %2143 = vmatprep.mubr.msk.bf16.mxu0 %vm1927_vm14, %v2275_v21  ;;  %v499_v58 = vpop.permute.xlu1 %498 }
 0x156   :  { %vm647_vm15 = vcmp.eq.s32.totalorder %v499_v58, %v2521_v14  ;;  %v496_v59 = vpop.permute.xlu0 %495 }
 0x157   :  { %vm646_vm0 = vcmp.eq.s32.totalorder %v496_v59, %v2521_v14 }
 0x158   :  { %vm1991_vm1 = vmpackc.low %vm647_vm15, %vm646_vm0 }
 0x159   :  { %2207 = vmatprep.mubr.msk.bf16.mxu1 %vm1991_vm1, %v2275_v21  ;;  %v313_v60 = vpop.permute.xlu1 %312 }
 0x15a   :  { %vm585_vm2 = vcmp.eq.s32.totalorder %v313_v60, %v2521_v14  ;;  %v310_v61 = vpop.permute.xlu0 %309 }
 0x15b   :  { %vm584_vm3 = vcmp.eq.s32.totalorder %v310_v61, %v2521_v14 }
 0x15c   :  { %vm1929_vm4 = vmpackc.low %vm585_vm2, %vm584_vm3 }
 0x15d   :  { %v2093_v63 = vpop.f32.mrb[0].mxu0  ;;  %2144 = vmatmul.mubr.msk.bf16.gmra.mrb[52].mxu0 %vm1929_vm4, %v2275_v21  ;;  %v505_v0 = vpop.permute.xlu1 %504 }
 0x15e   :  { %v1092_v1 = vadd.f32 %v2093_v63, %v2879_v62  ;;  %vm649_vm5 = vcmp.eq.s32.totalorder %v505_v0, %v2521_v14  ;;  %v1083_v2 = vpop.f32.mrb[1].mxu0  ;;  %v502_v3 = vpop.permute.xlu0 %501 }
 0x15f   :  { %v1084_v4 = vadd.f32 %v2879_v62, %v1083_v2  ;;  %vm648_vm6 = vcmp.eq.s32.totalorder %v502_v3, %v2521_v14  ;;  %v2094_v5 = vpop.f32.mrb[2].mxu0 }
 0x160   :  { %1596 = vst [vmem:[#allocation2 + $0x10] sm:$0xff] %v1092_v1  ;;  %vm1993_vm7 = vmpackc.low %vm649_vm5, %vm648_vm6  ;;  %v1095_v6 = vadd.f32 %v2094_v5, %v2879_v62  ;;  %v1086_v7 = vpop.f32.mrb[3].mxu0 }
 0x161   :  { %1594 = vst [vmem:[#allocation2] sm:$0xff] %v1084_v4  ;;  %v1087_v8 = vadd.f32 %v2879_v62, %v1086_v7  ;;  %2208 = vmatmul.mubr.msk.bf16.gmra.mrb[52].mxu1 %vm1993_vm7, %v2275_v21  ;;  %v319_v9 = vpop.permute.xlu1 %318 }
 0x162   :  { %1597 = vst [vmem:[#allocation2 + $0x18] sm:$0xff] %v1095_v6  ;;  %vm587_vm8 = vcmp.eq.s32.totalorder %v319_v9, %v2521_v14  ;;  %v316_v10 = vpop.permute.xlu0 %315 }
 0x163   :  { %1595 = vst [vmem:[#allocation2 + $0x8] sm:$0xff] %v1087_v8  ;;  %vm586_vm9 = vcmp.eq.s32.totalorder %v316_v10, %v2521_v14 }
 0x164   :  { %vm1931_vm10 = vmpackc.low %vm587_vm8, %vm586_vm9 }
 0x165   :  { %v2097_v11 = vpop.f32.mrb[4].mxu0  ;;  %2147 = vmatprep.mubr.msk.bf16.mxu0 %vm1931_vm10, %v2275_v21  ;;  %v511_v12 = vpop.permute.xlu1 %510 }
 0x166   :  { %v1108_v13 = vadd.f32 %v2097_v11, %v2879_v62  ;;  %vm651_vm11 = vcmp.eq.s32.totalorder %v511_v12, %v2521_v14  ;;  %v1099_v15 = vpop.f32.mrb[5].mxu0  ;;  %v508_v16 = vpop.permute.xlu0 %507 }
 0x167   :  { %v1100_v17 = vadd.f32 %v2879_v62, %v1099_v15  ;;  %vm650_vm12 = vcmp.eq.s32.totalorder %v508_v16, %v2521_v14  ;;  %v2098_v18 = vpop.f32.mrb[6].mxu0 }
 0x168   :  { %1600 = vst [vmem:[#allocation2 + $0x30] sm:$0xff] %v1108_v13  ;;  %vm1995_vm13 = vmpackc.low %vm651_vm11, %vm650_vm12  ;;  %v1111_v19 = vadd.f32 %v2098_v18, %v2879_v62  ;;  %v1102_v20 = vpop.f32.mrb[7].mxu0 }
 0x169   :  { %1598 = vst [vmem:[#allocation2 + $0x20] sm:$0xff] %v1100_v17  ;;  %v1103_v22 = vadd.f32 %v2879_v62, %v1102_v20  ;;  %2211 = vmatprep.mubr.msk.bf16.mxu1 %vm1995_vm13, %v2275_v21  ;;  %v325_v23 = vpop.permute.xlu1 %324 }
 0x16a   :  { %1601 = vst [vmem:[#allocation2 + $0x38] sm:$0xff] %v1111_v19  ;;  %vm589_vm14 = vcmp.eq.s32.totalorder %v325_v23, %v2521_v14  ;;  %v322_v24 = vpop.permute.xlu0 %321 }
 0x16b   :  { %1599 = vst [vmem:[#allocation2 + $0x28] sm:$0xff] %v1103_v22  ;;  %vm588_vm15 = vcmp.eq.s32.totalorder %v322_v24, %v2521_v14 }
 0x16c   :  { %vm1933_vm0 = vmpackc.low %vm589_vm14, %vm588_vm15 }
 0x16d   :  { %v2101_v25 = vpop.f32.mrb[8].mxu0  ;;  %2148 = vmatmul.mubr.msk.bf16.gmra.mrb[56].mxu0 %vm1933_vm0, %v2275_v21  ;;  %v517_v26 = vpop.permute.xlu1 %516 }
 0x16e   :  { %v1124_v27 = vadd.f32 %v2101_v25, %v2879_v62  ;;  %vm653_vm1 = vcmp.eq.s32.totalorder %v517_v26, %v2521_v14  ;;  %v1115_v28 = vpop.f32.mrb[9].mxu0  ;;  %v514_v29 = vpop.permute.xlu0 %513 }
 0x16f   :  { %v1116_v30 = vadd.f32 %v2879_v62, %v1115_v28  ;;  %vm652_vm2 = vcmp.eq.s32.totalorder %v514_v29, %v2521_v14  ;;  %v2102_v31 = vpop.f32.mrb[10].mxu0 }
 0x170   :  { %1604 = vst [vmem:[#allocation2 + $0x50] sm:$0xff] %v1124_v27  ;;  %vm1997_vm3 = vmpackc.low %vm653_vm1, %vm652_vm2  ;;  %v1127_v32 = vadd.f32 %v2102_v31, %v2879_v62  ;;  %v1118_v33 = vpop.f32.mrb[11].mxu0 }
 0x171   :  { %1602 = vst [vmem:[#allocation2 + $0x40] sm:$0xff] %v1116_v30  ;;  %v1119_v34 = vadd.f32 %v2879_v62, %v1118_v33  ;;  %2212 = vmatmul.mubr.msk.bf16.gmra.mrb[56].mxu1 %vm1997_vm3, %v2275_v21  ;;  %v331_v35 = vpop.permute.xlu1 %330 }
 0x172   :  { %1605 = vst [vmem:[#allocation2 + $0x58] sm:$0xff] %v1127_v32  ;;  %vm591_vm4 = vcmp.eq.s32.totalorder %v331_v35, %v2521_v14  ;;  %v328_v36 = vpop.permute.xlu0 %327 }
 0x173   :  { %1603 = vst [vmem:[#allocation2 + $0x48] sm:$0xff] %v1119_v34  ;;  %vm590_vm5 = vcmp.eq.s32.totalorder %v328_v36, %v2521_v14 }
 0x174   :  { %vm1935_vm6 = vmpackc.low %vm591_vm4, %vm590_vm5 }
 0x175   :  { %v2105_v37 = vpop.f32.mrb[12].mxu0  ;;  %2151 = vmatprep.mubr.msk.bf16.mxu0 %vm1935_vm6, %v2275_v21  ;;  %v523_v38 = vpop.permute.xlu1 %522 }
 0x176   :  { %v1140_v39 = vadd.f32 %v2105_v37, %v2879_v62  ;;  %vm655_vm7 = vcmp.eq.s32.totalorder %v523_v38, %v2521_v14  ;;  %v1131_v40 = vpop.f32.mrb[13].mxu0  ;;  %v520_v41 = vpop.permute.xlu0 %519 }
 0x177   :  { %v1132_v42 = vadd.f32 %v2879_v62, %v1131_v40  ;;  %vm654_vm8 = vcmp.eq.s32.totalorder %v520_v41, %v2521_v14  ;;  %v2106_v43 = vpop.f32.mrb[14].mxu0 }
 0x178   :  { %1608 = vst [vmem:[#allocation2 + $0x70] sm:$0xff] %v1140_v39  ;;  %vm1999_vm9 = vmpackc.low %vm655_vm7, %vm654_vm8  ;;  %v1143_v44 = vadd.f32 %v2106_v43, %v2879_v62  ;;  %v1134_v45 = vpop.f32.mrb[15].mxu0 }
 0x179   :  { %1606 = vst [vmem:[#allocation2 + $0x60] sm:$0xff] %v1132_v42  ;;  %v1135_v46 = vadd.f32 %v2879_v62, %v1134_v45  ;;  %2215 = vmatprep.mubr.msk.bf16.mxu1 %vm1999_vm9, %v2275_v21  ;;  %v337_v47 = vpop.permute.xlu1 %336 }
 0x17a   :  { %1609 = vst [vmem:[#allocation2 + $0x78] sm:$0xff] %v1143_v44  ;;  %vm593_vm10 = vcmp.eq.s32.totalorder %v337_v47, %v2521_v14  ;;  %v334_v48 = vpop.permute.xlu0 %333 }
 0x17b   :  { %1607 = vst [vmem:[#allocation2 + $0x68] sm:$0xff] %v1135_v46  ;;  %vm592_vm11 = vcmp.eq.s32.totalorder %v334_v48, %v2521_v14 }
 0x17c   :  { %vm1937_vm12 = vmpackc.low %vm593_vm10, %vm592_vm11 }
 0x17d   :  { %v2109_v49 = vpop.f32.mrb[16].mxu0  ;;  %2152 = vmatmul.mubr.msk.bf16.gmra.mrb[60].mxu0 %vm1937_vm12, %v2275_v21  ;;  %v529_v50 = vpop.permute.xlu1 %528 }
 0x17e   :  { %v1156_v51 = vadd.f32 %v2109_v49, %v2879_v62  ;;  %vm657_vm13 = vcmp.eq.s32.totalorder %v529_v50, %v2521_v14  ;;  %v1147_v52 = vpop.f32.mrb[17].mxu0  ;;  %v526_v53 = vpop.permute.xlu0 %525 }
 0x17f   :  { %v1148_v54 = vadd.f32 %v2879_v62, %v1147_v52  ;;  %vm656_vm14 = vcmp.eq.s32.totalorder %v526_v53, %v2521_v14  ;;  %v2110_v55 = vpop.f32.mrb[18].mxu0 }
 0x180   :  { %1612 = vst [vmem:[#allocation2 + $0x90] sm:$0xff] %v1156_v51  ;;  %vm2001_vm15 = vmpackc.low %vm657_vm13, %vm656_vm14  ;;  %v1159_v56 = vadd.f32 %v2110_v55, %v2879_v62  ;;  %v1150_v57 = vpop.f32.mrb[19].mxu0 }
 0x181   :  { %1610 = vst [vmem:[#allocation2 + $0x80] sm:$0xff] %v1148_v54  ;;  %v1151_v58 = vadd.f32 %v2879_v62, %v1150_v57  ;;  %2216 = vmatmul.mubr.msk.bf16.gmra.mrb[60].mxu1 %vm2001_vm15, %v2275_v21 }
 0x182   :  { %1613 = vst [vmem:[#allocation2 + $0x98] sm:$0xff] %v1159_v56 }
 0x183   :  { %1611 = vst [vmem:[#allocation2 + $0x88] sm:$0xff] %v1151_v58 }
 0x185   :  { %v2113_v59 = vpop.f32.mrb[20].mxu0 }
 0x186   :  { %v1172_v60 = vadd.f32 %v2113_v59, %v2879_v62  ;;  %v1163_v61 = vpop.f32.mrb[21].mxu0 }
 0x187   :  { %v1164_v63 = vadd.f32 %v2879_v62, %v1163_v61  ;;  %v2114_v14 = vpop.f32.mrb[22].mxu0 }
 0x188   :  { %1616 = vst [vmem:[#allocation2 + $0xb0] sm:$0xff] %v1172_v60  ;;  %v1175_v0 = vadd.f32 %v2114_v14, %v2879_v62  ;;  %v1166_v1 = vpop.f32.mrb[23].mxu0 }
 0x189   :  { %1614 = vst [vmem:[#allocation2 + $0xa0] sm:$0xff] %v1164_v63  ;;  %v1167_v2 = vadd.f32 %v2879_v62, %v1166_v1 }
 0x18a   :  { %1617 = vst [vmem:[#allocation2 + $0xb8] sm:$0xff] %v1175_v0 }
 0x18b   :  { %1615 = vst [vmem:[#allocation2 + $0xa8] sm:$0xff] %v1167_v2 }
 0x193   :  { %v2157_v3 = vpop.f32.mrb[0].mxu1 }
 0x194   :  { %v1348_v21 = vadd.f32 %v2157_v3, %v2879_v62  ;;  %v1339_v4 = vpop.f32.mrb[1].mxu1 }
 0x195   :  { %v1340_v5 = vadd.f32 %v2879_v62, %v1339_v4  ;;  %v2158_v6 = vpop.f32.mrb[2].mxu1 }
 0x196   :  { %1660 = vst [vmem:[#allocation2 + $0x210] sm:$0xff] %v1348_v21  ;;  %v1351_v7 = vadd.f32 %v2158_v6, %v2879_v62  ;;  %v1342_v8 = vpop.f32.mrb[3].mxu1 }
 0x197   :  { %1658 = vst [vmem:[#allocation2 + $0x200] sm:$0xff] %v1340_v5  ;;  %v1343_v9 = vadd.f32 %v2879_v62, %v1342_v8 }
 0x198   :  { %1661 = vst [vmem:[#allocation2 + $0x218] sm:$0xff] %v1351_v7 }
 0x199   :  { %1659 = vst [vmem:[#allocation2 + $0x208] sm:$0xff] %v1343_v9 }
 0x19b   :  { %v2161_v10 = vpop.f32.mrb[4].mxu1 }
 0x19c   :  { %v1364_v11 = vadd.f32 %v2161_v10, %v2879_v62  ;;  %v1355_v12 = vpop.f32.mrb[5].mxu1 }
 0x19d   :  { %v1356_v13 = vadd.f32 %v2879_v62, %v1355_v12  ;;  %v2162_v15 = vpop.f32.mrb[6].mxu1 }
 0x19e   :  { %1664 = vst [vmem:[#allocation2 + $0x230] sm:$0xff] %v1364_v11  ;;  %v1367_v16 = vadd.f32 %v2162_v15, %v2879_v62  ;;  %v1358_v17 = vpop.f32.mrb[7].mxu1 }
 0x19f   :  { %1662 = vst [vmem:[#allocation2 + $0x220] sm:$0xff] %v1356_v13  ;;  %v1359_v18 = vadd.f32 %v2879_v62, %v1358_v17 }
 0x1a0   :  { %1665 = vst [vmem:[#allocation2 + $0x238] sm:$0xff] %v1367_v16 }
 0x1a1   :  { %1663 = vst [vmem:[#allocation2 + $0x228] sm:$0xff] %v1359_v18 }
 0x1a3   :  { %v2165_v19 = vpop.f32.mrb[8].mxu1 }
 0x1a4   :  { %v1380_v20 = vadd.f32 %v2165_v19, %v2879_v62  ;;  %v1371_v22 = vpop.f32.mrb[9].mxu1 }
 0x1a5   :  { %v1372_v23 = vadd.f32 %v2879_v62, %v1371_v22  ;;  %v2166_v24 = vpop.f32.mrb[10].mxu1 }
 0x1a6   :  { %1668 = vst [vmem:[#allocation2 + $0x250] sm:$0xff] %v1380_v20  ;;  %v1383_v25 = vadd.f32 %v2166_v24, %v2879_v62  ;;  %v1374_v26 = vpop.f32.mrb[11].mxu1 }
 0x1a7   :  { %1666 = vst [vmem:[#allocation2 + $0x240] sm:$0xff] %v1372_v23  ;;  %v1375_v27 = vadd.f32 %v2879_v62, %v1374_v26 }
 0x1a8   :  { %1669 = vst [vmem:[#allocation2 + $0x258] sm:$0xff] %v1383_v25 }
 0x1a9   :  { %1667 = vst [vmem:[#allocation2 + $0x248] sm:$0xff] %v1375_v27 }
 0x1ab   :  { %v2169_v28 = vpop.f32.mrb[12].mxu1 }
 0x1ac   :  { %v1396_v29 = vadd.f32 %v2169_v28, %v2879_v62  ;;  %v1387_v30 = vpop.f32.mrb[13].mxu1 }
 0x1ad   :  { %v1388_v31 = vadd.f32 %v2879_v62, %v1387_v30  ;;  %v2170_v32 = vpop.f32.mrb[14].mxu1 }
 0x1ae   :  { %1672 = vst [vmem:[#allocation2 + $0x270] sm:$0xff] %v1396_v29  ;;  %v1399_v33 = vadd.f32 %v2170_v32, %v2879_v62  ;;  %v1390_v34 = vpop.f32.mrb[15].mxu1 }
 0x1af   :  { %1670 = vst [vmem:[#allocation2 + $0x260] sm:$0xff] %v1388_v31  ;;  %v1391_v35 = vadd.f32 %v2879_v62, %v1390_v34 }
 0x1b0   :  { %1673 = vst [vmem:[#allocation2 + $0x278] sm:$0xff] %v1399_v33 }
 0x1b1   :  { %1671 = vst [vmem:[#allocation2 + $0x268] sm:$0xff] %v1391_v35 }
 0x1b3   :  { %v2173_v36 = vpop.f32.mrb[16].mxu1 }
 0x1b4   :  { %v1412_v37 = vadd.f32 %v2173_v36, %v2879_v62  ;;  %v1403_v38 = vpop.f32.mrb[17].mxu1 }
 0x1b5   :  { %v1404_v39 = vadd.f32 %v2879_v62, %v1403_v38  ;;  %v2174_v40 = vpop.f32.mrb[18].mxu1 }
 0x1b6   :  { %1676 = vst [vmem:[#allocation2 + $0x290] sm:$0xff] %v1412_v37  ;;  %v1415_v41 = vadd.f32 %v2174_v40, %v2879_v62  ;;  %v1406_v42 = vpop.f32.mrb[19].mxu1 }
 0x1b7   :  { %1674 = vst [vmem:[#allocation2 + $0x280] sm:$0xff] %v1404_v39  ;;  %v1407_v43 = vadd.f32 %v2879_v62, %v1406_v42 }
 0x1b8   :  { %1677 = vst [vmem:[#allocation2 + $0x298] sm:$0xff] %v1415_v41 }
 0x1b9   :  { %1675 = vst [vmem:[#allocation2 + $0x288] sm:$0xff] %v1407_v43 }
 0x1bb   :  { %v2177_v44 = vpop.f32.mrb[20].mxu1 }
 0x1bc   :  { %v1428_v45 = vadd.f32 %v2177_v44, %v2879_v62  ;;  %v1419_v46 = vpop.f32.mrb[21].mxu1 }
 0x1bd   :  { %v1420_v47 = vadd.f32 %v2879_v62, %v1419_v46  ;;  %v2178_v48 = vpop.f32.mrb[22].mxu1 }
 0x1be   :  { %1680 = vst [vmem:[#allocation2 + $0x2b0] sm:$0xff] %v1428_v45  ;;  %v1431_v49 = vadd.f32 %v2178_v48, %v2879_v62  ;;  %v1422_v50 = vpop.f32.mrb[23].mxu1 }
 0x1bf   :  { %1678 = vst [vmem:[#allocation2 + $0x2a0] sm:$0xff] %v1420_v47  ;;  %v1423_v51 = vadd.f32 %v2879_v62, %v1422_v50  ;;  %v2117_v52 = vpop.f32.mrb[24].mxu0 }
 0x1c0   :  { %1681 = vst [vmem:[#allocation2 + $0x2b8] sm:$0xff] %v1431_v49  ;;  %v1188_v53 = vadd.f32 %v2117_v52, %v2879_v62  ;;  %v1179_v54 = vpop.f32.mrb[25].mxu0 }
 0x1c1   :  { %1679 = vst [vmem:[#allocation2 + $0x2a8] sm:$0xff] %v1423_v51  ;;  %v1180_v55 = vadd.f32 %v2879_v62, %v1179_v54  ;;  %v2118_v56 = vpop.f32.mrb[26].mxu0 }
 0x1c2   :  { %1620 = vst [vmem:[#allocation2 + $0xd0] sm:$0xff] %v1188_v53  ;;  %v1191_v57 = vadd.f32 %v2118_v56, %v2879_v62  ;;  %v1182_v58 = vpop.f32.mrb[27].mxu0 }
 0x1c3   :  { %1618 = vst [vmem:[#allocation2 + $0xc0] sm:$0xff] %v1180_v55  ;;  %v1183_v59 = vadd.f32 %v2879_v62, %v1182_v58  ;;  %v2181_v60 = vpop.f32.mrb[24].mxu1 }
 0x1c4   :  { %1621 = vst [vmem:[#allocation2 + $0xd8] sm:$0xff] %v1191_v57  ;;  %v1444_v61 = vadd.f32 %v2181_v60, %v2879_v62  ;;  %v1435_v63 = vpop.f32.mrb[25].mxu1 }
 0x1c5   :  { %1619 = vst [vmem:[#allocation2 + $0xc8] sm:$0xff] %v1183_v59  ;;  %v1436_v14 = vadd.f32 %v2879_v62, %v1435_v63  ;;  %v2182_v0 = vpop.f32.mrb[26].mxu1 }
 0x1c6   :  { %1684 = vst [vmem:[#allocation2 + $0x2d0] sm:$0xff] %v1444_v61  ;;  %v1447_v1 = vadd.f32 %v2182_v0, %v2879_v62  ;;  %v1438_v2 = vpop.f32.mrb[27].mxu1 }
 0x1c7   :  { %1682 = vst [vmem:[#allocation2 + $0x2c0] sm:$0xff] %v1436_v14  ;;  %v1439_v3 = vadd.f32 %v2879_v62, %v1438_v2 }
 0x1c8   :  { %1685 = vst [vmem:[#allocation2 + $0x2d8] sm:$0xff] %v1447_v1 }
 0x1c9   :  { %1683 = vst [vmem:[#allocation2 + $0x2c8] sm:$0xff] %v1439_v3 }
 0x1cf   :  { %v2121_v21 = vpop.f32.mrb[28].mxu0 }
 0x1d0   :  { %v1204_v4 = vadd.f32 %v2121_v21, %v2879_v62  ;;  %v1195_v5 = vpop.f32.mrb[29].mxu0 }
 0x1d1   :  { %v1196_v6 = vadd.f32 %v2879_v62, %v1195_v5  ;;  %v2122_v7 = vpop.f32.mrb[30].mxu0 }
 0x1d2   :  { %1624 = vst [vmem:[#allocation2 + $0xf0] sm:$0xff] %v1204_v4  ;;  %v1207_v8 = vadd.f32 %v2122_v7, %v2879_v62  ;;  %v1198_v9 = vpop.f32.mrb[31].mxu0 }
 0x1d3   :  { %1622 = vst [vmem:[#allocation2 + $0xe0] sm:$0xff] %v1196_v6  ;;  %v1199_v10 = vadd.f32 %v2879_v62, %v1198_v9  ;;  %v2185_v11 = vpop.f32.mrb[28].mxu1 }
 0x1d4   :  { %1625 = vst [vmem:[#allocation2 + $0xf8] sm:$0xff] %v1207_v8  ;;  %v1460_v12 = vadd.f32 %v2185_v11, %v2879_v62  ;;  %v1451_v13 = vpop.f32.mrb[29].mxu1 }
 0x1d5   :  { %1623 = vst [vmem:[#allocation2 + $0xe8] sm:$0xff] %v1199_v10  ;;  %v1452_v15 = vadd.f32 %v2879_v62, %v1451_v13  ;;  %v2186_v16 = vpop.f32.mrb[30].mxu1 }
 0x1d6   :  { %1688 = vst [vmem:[#allocation2 + $0x2f0] sm:$0xff] %v1460_v12  ;;  %v1463_v17 = vadd.f32 %v2186_v16, %v2879_v62  ;;  %v1454_v18 = vpop.f32.mrb[31].mxu1 }
 0x1d7   :  { %1686 = vst [vmem:[#allocation2 + $0x2e0] sm:$0xff] %v1452_v15  ;;  %v1455_v19 = vadd.f32 %v2879_v62, %v1454_v18 }
 0x1d8   :  { %1689 = vst [vmem:[#allocation2 + $0x2f8] sm:$0xff] %v1463_v17 }
 0x1d9   :  { %1687 = vst [vmem:[#allocation2 + $0x2e8] sm:$0xff] %v1455_v19 }
 0x1e0   :  { %v2125_v20 = vpop.f32.mrb[32].mxu0 }
 0x1e1   :  { %v1220_v22 = vadd.f32 %v2125_v20, %v2879_v62  ;;  %v1211_v23 = vpop.f32.mrb[33].mxu0 }
 0x1e2   :  { %v1212_v24 = vadd.f32 %v2879_v62, %v1211_v23  ;;  %v2126_v25 = vpop.f32.mrb[34].mxu0 }
 0x1e3   :  { %1628 = vst [vmem:[#allocation2 + $0x110] sm:$0xff] %v1220_v22  ;;  %v1223_v26 = vadd.f32 %v2126_v25, %v2879_v62  ;;  %v1214_v27 = vpop.f32.mrb[35].mxu0 }
 0x1e4   :  { %1626 = vst [vmem:[#allocation2 + $0x100] sm:$0xff] %v1212_v24  ;;  %v1215_v28 = vadd.f32 %v2879_v62, %v1214_v27  ;;  %v2189_v29 = vpop.f32.mrb[32].mxu1 }
 0x1e5   :  { %1629 = vst [vmem:[#allocation2 + $0x118] sm:$0xff] %v1223_v26  ;;  %v1476_v30 = vadd.f32 %v2189_v29, %v2879_v62  ;;  %v1467_v31 = vpop.f32.mrb[33].mxu1 }
 0x1e6   :  { %1627 = vst [vmem:[#allocation2 + $0x108] sm:$0xff] %v1215_v28  ;;  %v1468_v32 = vadd.f32 %v2879_v62, %v1467_v31  ;;  %v2190_v33 = vpop.f32.mrb[34].mxu1 }
 0x1e7   :  { %1692 = vst [vmem:[#allocation2 + $0x310] sm:$0xff] %v1476_v30  ;;  %v1479_v34 = vadd.f32 %v2190_v33, %v2879_v62  ;;  %v1470_v35 = vpop.f32.mrb[35].mxu1 }
 0x1e8   :  { %1690 = vst [vmem:[#allocation2 + $0x300] sm:$0xff] %v1468_v32  ;;  %v1471_v36 = vadd.f32 %v2879_v62, %v1470_v35 }
 0x1e9   :  { %1693 = vst [vmem:[#allocation2 + $0x318] sm:$0xff] %v1479_v34 }
 0x1ea   :  { %1691 = vst [vmem:[#allocation2 + $0x308] sm:$0xff] %v1471_v36 }
 0x1f0   :  { %v2129_v37 = vpop.f32.mrb[36].mxu0 }
 0x1f1   :  { %v1236_v38 = vadd.f32 %v2129_v37, %v2879_v62  ;;  %v1227_v39 = vpop.f32.mrb[37].mxu0 }
 0x1f2   :  { %v1228_v40 = vadd.f32 %v2879_v62, %v1227_v39  ;;  %v2130_v41 = vpop.f32.mrb[38].mxu0 }
 0x1f3   :  { %1632 = vst [vmem:[#allocation2 + $0x130] sm:$0xff] %v1236_v38  ;;  %v1239_v42 = vadd.f32 %v2130_v41, %v2879_v62  ;;  %v1230_v43 = vpop.f32.mrb[39].mxu0 }
 0x1f4   :  { %1630 = vst [vmem:[#allocation2 + $0x120] sm:$0xff] %v1228_v40  ;;  %v1231_v44 = vadd.f32 %v2879_v62, %v1230_v43  ;;  %v2193_v45 = vpop.f32.mrb[36].mxu1 }
 0x1f5   :  { %1633 = vst [vmem:[#allocation2 + $0x138] sm:$0xff] %v1239_v42  ;;  %v1492_v46 = vadd.f32 %v2193_v45, %v2879_v62  ;;  %v1483_v47 = vpop.f32.mrb[37].mxu1 }
 0x1f6   :  { %1631 = vst [vmem:[#allocation2 + $0x128] sm:$0xff] %v1231_v44  ;;  %v1484_v48 = vadd.f32 %v2879_v62, %v1483_v47  ;;  %v2194_v49 = vpop.f32.mrb[38].mxu1 }
 0x1f7   :  { %1696 = vst [vmem:[#allocation2 + $0x330] sm:$0xff] %v1492_v46  ;;  %v1495_v50 = vadd.f32 %v2194_v49, %v2879_v62  ;;  %v1486_v51 = vpop.f32.mrb[39].mxu1 }
 0x1f8   :  { %1694 = vst [vmem:[#allocation2 + $0x320] sm:$0xff] %v1484_v48  ;;  %v1487_v52 = vadd.f32 %v2879_v62, %v1486_v51 }
 0x1f9   :  { %1697 = vst [vmem:[#allocation2 + $0x338] sm:$0xff] %v1495_v50 }
 0x1fa   :  { %1695 = vst [vmem:[#allocation2 + $0x328] sm:$0xff] %v1487_v52 }
 0x200   :  { %v2133_v53 = vpop.f32.mrb[40].mxu0 }
 0x201   :  { %v1252_v54 = vadd.f32 %v2133_v53, %v2879_v62  ;;  %v1243_v55 = vpop.f32.mrb[41].mxu0 }
 0x202   :  { %v1244_v56 = vadd.f32 %v2879_v62, %v1243_v55  ;;  %v2134_v57 = vpop.f32.mrb[42].mxu0 }
 0x203   :  { %1636 = vst [vmem:[#allocation2 + $0x150] sm:$0xff] %v1252_v54  ;;  %v1255_v58 = vadd.f32 %v2134_v57, %v2879_v62  ;;  %v1246_v59 = vpop.f32.mrb[43].mxu0 }
 0x204   :  { %1634 = vst [vmem:[#allocation2 + $0x140] sm:$0xff] %v1244_v56  ;;  %v1247_v60 = vadd.f32 %v2879_v62, %v1246_v59  ;;  %v2197_v61 = vpop.f32.mrb[40].mxu1 }
 0x205   :  { %1637 = vst [vmem:[#allocation2 + $0x158] sm:$0xff] %v1255_v58  ;;  %v1508_v63 = vadd.f32 %v2197_v61, %v2879_v62  ;;  %v1499_v14 = vpop.f32.mrb[41].mxu1 }
 0x206   :  { %1635 = vst [vmem:[#allocation2 + $0x148] sm:$0xff] %v1247_v60  ;;  %v1500_v0 = vadd.f32 %v2879_v62, %v1499_v14  ;;  %v2198_v1 = vpop.f32.mrb[42].mxu1 }
 0x207   :  { %1700 = vst [vmem:[#allocation2 + $0x350] sm:$0xff] %v1508_v63  ;;  %v1511_v2 = vadd.f32 %v2198_v1, %v2879_v62  ;;  %v1502_v3 = vpop.f32.mrb[43].mxu1 }
 0x208   :  { %1698 = vst [vmem:[#allocation2 + $0x340] sm:$0xff] %v1500_v0  ;;  %v1503_v21 = vadd.f32 %v2879_v62, %v1502_v3 }
 0x209   :  { %1701 = vst [vmem:[#allocation2 + $0x358] sm:$0xff] %v1511_v2 }
 0x20a   :  { %1699 = vst [vmem:[#allocation2 + $0x348] sm:$0xff] %v1503_v21 }
 0x210   :  { %v2137_v4 = vpop.f32.mrb[44].mxu0 }
 0x211   :  { %v1268_v5 = vadd.f32 %v2137_v4, %v2879_v62  ;;  %v1259_v6 = vpop.f32.mrb[45].mxu0 }
 0x212   :  { %v1260_v7 = vadd.f32 %v2879_v62, %v1259_v6  ;;  %v2138_v8 = vpop.f32.mrb[46].mxu0 }
 0x213   :  { %1640 = vst [vmem:[#allocation2 + $0x170] sm:$0xff] %v1268_v5  ;;  %v1271_v9 = vadd.f32 %v2138_v8, %v2879_v62  ;;  %v1262_v10 = vpop.f32.mrb[47].mxu0 }
 0x214   :  { %1638 = vst [vmem:[#allocation2 + $0x160] sm:$0xff] %v1260_v7  ;;  %v1263_v11 = vadd.f32 %v2879_v62, %v1262_v10  ;;  %v2201_v12 = vpop.f32.mrb[44].mxu1 }
 0x215   :  { %1641 = vst [vmem:[#allocation2 + $0x178] sm:$0xff] %v1271_v9  ;;  %v1524_v13 = vadd.f32 %v2201_v12, %v2879_v62  ;;  %v1515_v15 = vpop.f32.mrb[45].mxu1 }
 0x216   :  { %1639 = vst [vmem:[#allocation2 + $0x168] sm:$0xff] %v1263_v11  ;;  %v1516_v16 = vadd.f32 %v2879_v62, %v1515_v15  ;;  %v2202_v17 = vpop.f32.mrb[46].mxu1 }
 0x217   :  { %1704 = vst [vmem:[#allocation2 + $0x370] sm:$0xff] %v1524_v13  ;;  %v1527_v18 = vadd.f32 %v2202_v17, %v2879_v62  ;;  %v1518_v19 = vpop.f32.mrb[47].mxu1 }
 0x218   :  { %1702 = vst [vmem:[#allocation2 + $0x360] sm:$0xff] %v1516_v16  ;;  %v1519_v20 = vadd.f32 %v2879_v62, %v1518_v19 }
 0x219   :  { %1705 = vst [vmem:[#allocation2 + $0x378] sm:$0xff] %v1527_v18 }
 0x21a   :  { %1703 = vst [vmem:[#allocation2 + $0x368] sm:$0xff] %v1519_v20 }
 0x220   :  { %v2141_v22 = vpop.f32.mrb[48].mxu0 }
 0x221   :  { %v1284_v23 = vadd.f32 %v2141_v22, %v2879_v62  ;;  %v1275_v24 = vpop.f32.mrb[49].mxu0 }
 0x222   :  { %v1276_v25 = vadd.f32 %v2879_v62, %v1275_v24  ;;  %v2142_v26 = vpop.f32.mrb[50].mxu0 }
 0x223   :  { %1644 = vst [vmem:[#allocation2 + $0x190] sm:$0xff] %v1284_v23  ;;  %v1287_v27 = vadd.f32 %v2142_v26, %v2879_v62  ;;  %v1278_v28 = vpop.f32.mrb[51].mxu0 }
 0x224   :  { %1642 = vst [vmem:[#allocation2 + $0x180] sm:$0xff] %v1276_v25  ;;  %v1279_v29 = vadd.f32 %v2879_v62, %v1278_v28  ;;  %v2205_v30 = vpop.f32.mrb[48].mxu1 }
 0x225   :  { %1645 = vst [vmem:[#allocation2 + $0x198] sm:$0xff] %v1287_v27  ;;  %v1540_v31 = vadd.f32 %v2205_v30, %v2879_v62  ;;  %v1531_v32 = vpop.f32.mrb[49].mxu1 }
 0x226   :  { %1643 = vst [vmem:[#allocation2 + $0x188] sm:$0xff] %v1279_v29  ;;  %v1532_v33 = vadd.f32 %v2879_v62, %v1531_v32  ;;  %v2206_v34 = vpop.f32.mrb[50].mxu1 }
 0x227   :  { %1708 = vst [vmem:[#allocation2 + $0x390] sm:$0xff] %v1540_v31  ;;  %v1543_v35 = vadd.f32 %v2206_v34, %v2879_v62  ;;  %v1534_v36 = vpop.f32.mrb[51].mxu1 }
 0x228   :  { %1706 = vst [vmem:[#allocation2 + $0x380] sm:$0xff] %v1532_v33  ;;  %v1535_v37 = vadd.f32 %v2879_v62, %v1534_v36 }
 0x229   :  { %1709 = vst [vmem:[#allocation2 + $0x398] sm:$0xff] %v1543_v35 }
 0x22a   :  { %1707 = vst [vmem:[#allocation2 + $0x388] sm:$0xff] %v1535_v37 }
 0x230   :  { %v2145_v38 = vpop.f32.mrb[52].mxu0 }
 0x231   :  { %v1300_v39 = vadd.f32 %v2145_v38, %v2879_v62  ;;  %v1291_v40 = vpop.f32.mrb[53].mxu0 }
 0x232   :  { %v1292_v41 = vadd.f32 %v2879_v62, %v1291_v40  ;;  %v2146_v42 = vpop.f32.mrb[54].mxu0 }
 0x233   :  { %1648 = vst [vmem:[#allocation2 + $0x1b0] sm:$0xff] %v1300_v39  ;;  %v1303_v43 = vadd.f32 %v2146_v42, %v2879_v62  ;;  %v1294_v44 = vpop.f32.mrb[55].mxu0 }
 0x234   :  { %1646 = vst [vmem:[#allocation2 + $0x1a0] sm:$0xff] %v1292_v41  ;;  %v1295_v45 = vadd.f32 %v2879_v62, %v1294_v44  ;;  %v2209_v46 = vpop.f32.mrb[52].mxu1 }
 0x235   :  { %1649 = vst [vmem:[#allocation2 + $0x1b8] sm:$0xff] %v1303_v43  ;;  %v1556_v47 = vadd.f32 %v2209_v46, %v2879_v62  ;;  %v1547_v48 = vpop.f32.mrb[53].mxu1 }
 0x236   :  { %1647 = vst [vmem:[#allocation2 + $0x1a8] sm:$0xff] %v1295_v45  ;;  %v1548_v49 = vadd.f32 %v2879_v62, %v1547_v48  ;;  %v2210_v50 = vpop.f32.mrb[54].mxu1 }
 0x237   :  { %1712 = vst [vmem:[#allocation2 + $0x3b0] sm:$0xff] %v1556_v47  ;;  %v1559_v51 = vadd.f32 %v2210_v50, %v2879_v62  ;;  %v1550_v52 = vpop.f32.mrb[55].mxu1 }
 0x238   :  { %1710 = vst [vmem:[#allocation2 + $0x3a0] sm:$0xff] %v1548_v49  ;;  %v1551_v53 = vadd.f32 %v2879_v62, %v1550_v52 }
 0x239   :  { %1713 = vst [vmem:[#allocation2 + $0x3b8] sm:$0xff] %v1559_v51 }
 0x23a   :  { %1711 = vst [vmem:[#allocation2 + $0x3a8] sm:$0xff] %v1551_v53 }
 0x240   :  { %v2149_v54 = vpop.f32.mrb[56].mxu0 }
 0x241   :  { %v1316_v55 = vadd.f32 %v2149_v54, %v2879_v62  ;;  %v1307_v56 = vpop.f32.mrb[57].mxu0 }
 0x242   :  { %v1308_v57 = vadd.f32 %v2879_v62, %v1307_v56  ;;  %v2150_v58 = vpop.f32.mrb[58].mxu0 }
 0x243   :  { %1652 = vst [vmem:[#allocation2 + $0x1d0] sm:$0xff] %v1316_v55  ;;  %v1319_v59 = vadd.f32 %v2150_v58, %v2879_v62  ;;  %v1310_v60 = vpop.f32.mrb[59].mxu0 }
 0x244   :  { %1650 = vst [vmem:[#allocation2 + $0x1c0] sm:$0xff] %v1308_v57  ;;  %v1311_v61 = vadd.f32 %v2879_v62, %v1310_v60  ;;  %v2213_v63 = vpop.f32.mrb[56].mxu1 }
 0x245   :  { %1653 = vst [vmem:[#allocation2 + $0x1d8] sm:$0xff] %v1319_v59  ;;  %v1572_v14 = vadd.f32 %v2213_v63, %v2879_v62  ;;  %v1563_v0 = vpop.f32.mrb[57].mxu1 }
 0x246   :  { %1651 = vst [vmem:[#allocation2 + $0x1c8] sm:$0xff] %v1311_v61  ;;  %v1564_v1 = vadd.f32 %v2879_v62, %v1563_v0  ;;  %v2214_v2 = vpop.f32.mrb[58].mxu1 }
 0x247   :  { %1716 = vst [vmem:[#allocation2 + $0x3d0] sm:$0xff] %v1572_v14  ;;  %v1575_v3 = vadd.f32 %v2214_v2, %v2879_v62  ;;  %v1566_v21 = vpop.f32.mrb[59].mxu1 }
 0x248   :  { %1714 = vst [vmem:[#allocation2 + $0x3c0] sm:$0xff] %v1564_v1  ;;  %v1567_v4 = vadd.f32 %v2879_v62, %v1566_v21 }
 0x249   :  { %1717 = vst [vmem:[#allocation2 + $0x3d8] sm:$0xff] %v1575_v3 }
 0x24a   :  { %1715 = vst [vmem:[#allocation2 + $0x3c8] sm:$0xff] %v1567_v4 }
 0x250   :  { %v2153_v5 = vpop.f32.mrb[60].mxu0 }
 0x251   :  { %v1332_v6 = vadd.f32 %v2153_v5, %v2879_v62  ;;  %v1323_v7 = vpop.f32.mrb[61].mxu0 }
 0x252   :  { %v1324_v8 = vadd.f32 %v2879_v62, %v1323_v7  ;;  %v2154_v9 = vpop.f32.mrb[62].mxu0 }
 0x253   :  { %1656 = vst [vmem:[#allocation2 + $0x1f0] sm:$0xff] %v1332_v6  ;;  %v1335_v10 = vadd.f32 %v2154_v9, %v2879_v62  ;;  %v1326_v11 = vpop.f32.mrb[63].mxu0 }
 0x254   :  { %1654 = vst [vmem:[#allocation2 + $0x1e0] sm:$0xff] %v1324_v8  ;;  %v1327_v12 = vadd.f32 %v2879_v62, %v1326_v11  ;;  %v2217_v13 = vpop.f32.mrb[60].mxu1 }
 0x255   :  { %1657 = vst [vmem:[#allocation2 + $0x1f8] sm:$0xff] %v1335_v10  ;;  %v1588_v15 = vadd.f32 %v2217_v13, %v2879_v62  ;;  %v1579_v16 = vpop.f32.mrb[61].mxu1 }
 0x256   :  { %1655 = vst [vmem:[#allocation2 + $0x1e8] sm:$0xff] %v1327_v12  ;;  %v1580_v17 = vadd.f32 %v2879_v62, %v1579_v16  ;;  %v2218_v18 = vpop.f32.mrb[62].mxu1 }
 0x257   :  { %1720 = vst [vmem:[#allocation2 + $0x3f0] sm:$0xff] %v1588_v15  ;;  %v1591_v19 = vadd.f32 %v2218_v18, %v2879_v62  ;;  %v1582_v20 = vpop.f32.mrb[63].mxu1 }
 0x258   :  { %1718 = vst [vmem:[#allocation2 + $0x3e0] sm:$0xff] %v1580_v17  ;;  %v1583_v22 = vadd.f32 %v2879_v62, %v1582_v20 }
 0x259   :  { %1721 = vst [vmem:[#allocation2 + $0x3f8] sm:$0xff] %v1591_v19 }
 0x25a   :  { %1719 = vst [vmem:[#allocation2 + $0x3e8] sm:$0xff] %v1583_v22 }
 0x25b   :  { %2261 = shalt.err (!%p2258_p4)
}
 0x25c   :  { %s2262_s11 = scalar_lea.hbm %s3052_s3, 16384 }
 0x25d   :  { %p2263_p5 = scmp.ne.s32.totalorder %s3052_s3, %s2262_s11  ;;  %p2266_p6 = scmp.lt.u32.totalorder %s2262_s11, %s3052_s3 }
 0x25f   :  { %p2268_p7 = pnand %p2266_p6, %p2263_p5 }
 0x261   :  { %2271 = shalt.err (!%p2268_p7)
}
 0x262   :  { %s2277_s16 = smov 128   ;;  %s2278_s17 = smov 8  }
 0x263   :  { %1733 = dma.vmem_to_hbm [thread:$0]  %s1728_s7, 16384, %s3052_s3, [#allocation3], %s2277_s16, %s2277_s16, %s2278_s17  }
 0x264   :  { %2272 = dma.done.wait [#allocation3], 16384  }
 0x265   :  { %2273 = vsyncadd [#allocation3], 4294950912 }
 0x266   :  { %1737 = vsyncpa [#allocation3], 1 }

</bundles_post_ra>
